<compile_context>
chip_gen: v6e
topology: v6e:2x2x1
jax: 0.10.0
libtpu: 0.0.40
codegen_flags: <defaults>
</compile_context>

<pallas_src>
import functools

import jax
import jax.numpy as jnp
from jax.experimental import pallas as pl
from jax.experimental.pallas import tpu as pltpu

BN_EPS = 1e-5
H1 = 128
H2 = 32


def _disc_kernel(x_ref, w1_ref, b1_ref, w2_ref, b2_ref,
                 gamma_ref, beta_ref, w3_ref, b3_ref,
                 out_ref,
                 h2_scratch, stats_ref,
                 *, batch, tb, num_tiles):
    """Fused forward.  phase 0: hidden layers + BN stats; phase 1: BN + head."""
    phase = pl.program_id(0)
    i = pl.program_id(1)
    rem = batch - (num_tiles - 1) * tb          # rows in the last (partial) tile

    @pl.when(jnp.logical_and(phase == 0, i == 0))
    def _init():
        stats_ref[...] = jnp.zeros_like(stats_ref)

    @pl.when(phase == 0)
    def _hidden():
        # bf16 cast in-kernel: no extra wrapper-side HBM pass over x.
        x = x_ref[...].astype(jnp.bfloat16)                       # (tb, n_in)
        h1 = jnp.dot(x, w1_ref[...], preferred_element_type=jnp.float32)
        h1 = jnp.maximum(h1 + b1_ref[...], 0.0)                   # (tb, H1) f32
        # Dropout(0.3): identity (inference).
        # TODO(synk): stochastic dropout for train-mode parity.
        h2 = jnp.dot(h1.astype(jnp.bfloat16), w2_ref[...],
                     preferred_element_type=jnp.float32) + b2_ref[...]   # (tb, H2)

        row0 = pl.multiple_of(i * tb, tb)
        h2_scratch[pl.ds(row0, tb), :] = h2

        def accumulate(v):
            stats_ref[0:1, :] += jnp.sum(v, axis=0, keepdims=True)
            stats_ref[1:2, :] += jnp.sum(v * v, axis=0, keepdims=True)

        if rem == tb:
            # Batch divides the tile: no padded rows anywhere.
            accumulate(h2)
        else:
            # Only the last tile has undefined (out-of-bounds) rows: mask them
            # there and accumulate every other tile unmasked.
            @pl.when(i < num_tiles - 1)
            def _full_tiles():
                accumulate(h2)

            @pl.when(i == num_tiles - 1)
            def _last_tile():
                rows = jax.lax.broadcasted_iota(jnp.int32, (tb, 1), 0)
                accumulate(jnp.where(rows < rem, h2, 0.0))

    @pl.when(phase == 1)
    def _bn_head():
        inv_n = 1.0 / batch
        mean = stats_ref[0:1, :] * inv_n                          # (1, H2)
        # Single-pass E[x^2]-E[x]^2 (matches the JAX reference below).
        var = stats_ref[1:2, :] * inv_n - mean * mean
        scale = gamma_ref[...] * jax.lax.rsqrt(var + BN_EPS)
        shift = beta_ref[...] - mean * scale

        row0 = pl.multiple_of(i * tb, tb)
        h2 = h2_scratch[pl.ds(row0, tb), :]                       # (tb, H2) f32
        h = jnp.maximum(h2 * scale + shift, 0.0)
        # Dropout(0.3): identity (inference).
        # Linear(32,1) as a lane reduction -> 4 B/row output traffic.
        out_ref[...] = (jnp.sum(h * w3_ref[...], axis=1, keepdims=True)
                        + b3_ref[...])


def discriminator_forward(x, params, *, tb=512):
    """x: (B, n_input) float32.  Returns (B, 1) float32."""
    B, n_in = x.shape
    assert tb % 8 == 0, "batch tile must be a multiple of the f32 sublane (8)"
    num_tiles = pl.cdiv(B, tb)
    scratch_rows = num_tiles * tb

    # Conservative VMEM budget (h2 scratch lane-pads 32->128): fits v7x 64 MiB.
    vmem_est = (scratch_rows * 128 * 4          # resident h2 scratch
                + 2 * 2 * tb * n_in * 4         # double-buffered x tiles (f32)
                + (n_in * H1 + H1 * H2) * 2     # resident bf16 weights
                + 2 * tb * 128 * 4)             # output buffers
    assert vmem_est < 48 * 1024 * 1024, (
        "batch too large for resident-h2 fusion; chunk the batch across calls")

    w1 = params["w1"].astype(jnp.bfloat16)            # (n_in, 128)
    w2 = params["w2"].astype(jnp.bfloat16)            # (128, 32)
    b1, b2 = params["b1"], params["b2"]               # (1,128), (1,32)
    gamma, beta = params["gamma"], params["beta"]     # (1,32)
    w3_row = params["w3"].reshape(1, H2)              # (1, 32)
    b3 = params["b3"]                                 # (1, 1)

    kernel = functools.partial(_disc_kernel, batch=B, tb=tb, num_tiles=num_tiles)

    out = pl.pallas_call(
        kernel,
        out_shape=jax.ShapeDtypeStruct((B, 1), jnp.float32),
        grid_spec=pltpu.PrefetchScalarGridSpec(
            num_scalar_prefetch=0,
            grid=(2, num_tiles),                      # (phase, batch tile)
            in_specs=[
                # x: tile i in phase 0; pinned to the last-fetched tile in
                # phase 1 so no re-fetch happens while applying BN.
                pl.BlockSpec((tb, n_in),
                             lambda k, i: (i * (1 - k) + (num_tiles - 1) * k, 0)),
                pl.BlockSpec((n_in, H1), lambda k, i: (0, 0)),    # w1 (resident)
                pl.BlockSpec((1, H1), lambda k, i: (0, 0)),       # b1
                pl.BlockSpec((H1, H2), lambda k, i: (0, 0)),      # w2
                pl.BlockSpec((1, H2), lambda k, i: (0, 0)),       # b2
                pl.BlockSpec((1, H2), lambda k, i: (0, 0)),       # gamma
                pl.BlockSpec((1, H2), lambda k, i: (0, 0)),       # beta
                pl.BlockSpec((1, H2), lambda k, i: (0, 0)),       # w3 row
                pl.BlockSpec((1, 1), lambda k, i: (0, 0)),        # b3
            ],
            # Output block index is frozen at 0 during phase 0 (nothing is
            # written back) and walks the tiles during phase 1.
            out_specs=pl.BlockSpec((tb, 1), lambda k, i: (i * k, 0)),
            scratch_shapes=[
                pltpu.VMEM((scratch_rows, H2), jnp.float32),      # resident h2
                pltpu.VMEM((2, H2), jnp.float32),                 # BN sum / sumsq
            ],
        ),
        compiler_params=pltpu.CompilerParams(
            # phase must precede tiles; stats/h2 scratch carried across tiles.
            dimension_semantics=("arbitrary", "arbitrary"),
            vmem_limit_bytes=64 * 1024 * 1024,
        ),
        cost_estimate=pl.CostEstimate(
            flops=2 * B * (n_in * H1 + H1 * H2 + H2),
            transcendentals=0,
            bytes_accessed=(B * n_in * 4
                            + (n_in * H1 + H1 * H2) * 2
                            + B * 4),
        ),
    )(x, w1, b1, w2, b2, gamma, beta, w3_row, b3)

    return out


def init_params(key, n_input):
    """Deterministic init mimicking PyTorch's uniform(-1/sqrt(fan_in), ...)."""
    assert 64 < n_input <= 1000, "this script instantiates the middle branch"
    ks = jax.random.split(key, 6)

    def uni(k, shape, fan_in):
        bound = 1.0 / jnp.sqrt(fan_in)
        return jax.random.uniform(k, shape, jnp.float32, -bound, bound)

    return {
        # stored as (in, out) so the kernel does x @ W (PyTorch stores (out,in))
        "w1": uni(ks[0], (n_input, H1), n_input),
        "b1": uni(ks[1], (1, H1), n_input),
        "w2": uni(ks[2], (H1, H2), H1),
        "b2": uni(ks[3], (1, H2), H1),
        "gamma": jnp.ones((1, H2), jnp.float32),   # BatchNorm1d weight init
        "beta": jnp.zeros((1, H2), jnp.float32),   # BatchNorm1d bias init
        "w3": uni(ks[4], (H2, 1), H2),
        "b3": uni(ks[5], (1, 1), H2),
    }


def reference_forward(x, params):
    """Pure-JAX reference with identical numerics (bf16 dots, batch-stat BN)."""
    xb = x.astype(jnp.bfloat16)
    w1 = params["w1"].astype(jnp.bfloat16)
    w2 = params["w2"].astype(jnp.bfloat16)
    h1 = jnp.maximum(
        jnp.dot(xb, w1, preferred_element_type=jnp.float32) + params["b1"], 0.0)
    h2 = jnp.dot(h1.astype(jnp.bfloat16), w2,
                 preferred_element_type=jnp.float32) + params["b2"]
    mean = jnp.mean(h2, axis=0, keepdims=True)
    var = jnp.mean(h2 * h2, axis=0, keepdims=True) - mean * mean
    h = (h2 - mean) * jax.lax.rsqrt(var + BN_EPS)
    h = jnp.maximum(h * params["gamma"] + params["beta"], 0.0)
    return h @ params["w3"] + params["b3"]


if __name__ == "__main__":
    key = jax.random.PRNGKey(0)
    k_x, k_p = jax.random.split(key)

    B, N_INPUT = 200, 128   # middle branch: 64 < n_input <= 1000
    x = jax.random.normal(k_x, (B, N_INPUT), jnp.float32)
    params = init_params(k_p, N_INPUT)

    # tb=128 at this small B exercises 2 tiles + a 72-row partial remainder
    # (row-masked BN stats) plus both kernel phases.
    out = discriminator_forward(x, params, tb=128)
    out = jax.block_until_ready(out)

    ref = reference_forward(x, params)
    assert out.shape == (B, 1), out.shape
    max_err = float(jnp.max(jnp.abs(out - ref)))
    assert jnp.allclose(out, ref, atol=1e-3, rtol=1e-3), (max_err,)

    print("KERNEL_OK")
</pallas_src>

<mosaic_0001>
module attributes {stable_mosaic.version = 11 : i64} {
  func.func @_disc_kernel(%arg0: i32, %arg1: i32, %arg2: memref<128x128xf32, #tpu.memory_space<vmem>>, %arg3: memref<128x128xbf16, #tpu.memory_space<vmem>>, %arg4: memref<1x128xf32, #tpu.memory_space<vmem>>, %arg5: memref<128x32xbf16, #tpu.memory_space<vmem>>, %arg6: memref<1x32xf32, #tpu.memory_space<vmem>>, %arg7: memref<1x32xf32, #tpu.memory_space<vmem>>, %arg8: memref<1x32xf32, #tpu.memory_space<vmem>>, %arg9: memref<1x32xf32, #tpu.memory_space<vmem>>, %arg10: memref<1x1xf32, #tpu.memory_space<vmem>>, %arg11: memref<128x1xf32, #tpu.memory_space<vmem>>, %arg12: memref<256x32xf32, #tpu.memory_space<vmem>>, %arg13: memref<2x32xf32, #tpu.memory_space<vmem>>) attributes {dimension_semantics = [#tpu.dimension_semantics<arbitrary>, #tpu.dimension_semantics<arbitrary>], iteration_bounds = array<i64: 2, 2>, scalar_prefetch = 0 : i64, scratch_operands = 2 : i64, tpu.core_type = #tpu.core_type<tc>, window_params = [{transform_indices = @transform_0, window_bounds = array<i64: 128, 128>}, {pipeline_mode = #tpu.pipeline_mode<synchronous>, transform_indices = @transform_1, window_bounds = array<i64: 128, 128>}, {pipeline_mode = #tpu.pipeline_mode<synchronous>, transform_indices = @transform_2, window_bounds = array<i64: 1, 128>}, {pipeline_mode = #tpu.pipeline_mode<synchronous>, transform_indices = @transform_3, window_bounds = array<i64: 128, 32>}, {pipeline_mode = #tpu.pipeline_mode<synchronous>, transform_indices = @transform_4, window_bounds = array<i64: 1, 32>}, {pipeline_mode = #tpu.pipeline_mode<synchronous>, transform_indices = @transform_5, window_bounds = array<i64: 1, 32>}, {pipeline_mode = #tpu.pipeline_mode<synchronous>, transform_indices = @transform_6, window_bounds = array<i64: 1, 32>}, {pipeline_mode = #tpu.pipeline_mode<synchronous>, transform_indices = @transform_7, window_bounds = array<i64: 1, 32>}, {pipeline_mode = #tpu.pipeline_mode<synchronous>, transform_indices = @transform_8, window_bounds = array<i64: 1, 1>}, {transform_indices = @transform_9, window_bounds = array<i64: 128, 1>}]} {
    %c0_i32 = arith.constant 0 : i32
    %0 = arith.cmpi eq, %arg0, %c0_i32 : i32
    %c0_i32_0 = arith.constant 0 : i32
    %1 = arith.cmpi eq, %arg1, %c0_i32_0 : i32
    %2 = arith.andi %0, %1 : i1
    %3 = arith.extui %2 : i1 to i32
    %c0_i32_1 = arith.constant 0 : i32
    %4 = arith.cmpi ne, %3, %c0_i32_1 : i32
    scf.if %4 {
      %cst = arith.constant 0.000000e+00 : f32
      %11 = vector.broadcast %cst : f32 to vector<2x32xf32>
      %c0 = arith.constant 0 : index
      %c0_5 = arith.constant 0 : index
      %12 = vector.load %arg13[%c0, %c0_5] : memref<2x32xf32, #tpu.memory_space<vmem>>, vector<2x32xf32>
      tpu.vector_store %arg13[%c0, %c0_5], %11 {strides = array<i32>} : memref<2x32xf32, #tpu.memory_space<vmem>>, vector<2x32xf32>,
    } else {
    }
    %c0_i32_2 = arith.constant 0 : i32
    %5 = arith.cmpi eq, %arg0, %c0_i32_2 : i32
    %6 = arith.extui %5 : i1 to i32
    %c0_i32_3 = arith.constant 0 : i32
    %7 = arith.cmpi ne, %6, %c0_i32_3 : i32
    scf.if %7 {
      %c0 = arith.constant 0 : index
      %c0_5 = arith.constant 0 : index
      %11 = vector.load %arg2[%c0, %c0_5] : memref<128x128xf32, #tpu.memory_space<vmem>>, vector<128x128xf32>
      %12 = arith.truncf %11 : vector<128x128xf32> to vector<128x128xbf16>
      %c0_6 = arith.constant 0 : index
      %c0_7 = arith.constant 0 : index
      %13 = vector.load %arg3[%c0_6, %c0_7] : memref<128x128xbf16, #tpu.memory_space<vmem>>, vector<128x128xbf16>
      %cst = arith.constant dense<0.000000e+00> : vector<128x128xf32>
      %14 = tpu.matmul %12, %13, %cst {dimension_numbers = #tpu.dot_dimension_numbers<[1], [0], [0], [1], [0, 0, 1, 1], [], []>} : vector<128x128xbf16>, vector<128x128xbf16>, vector<128x128xf32> -> vector<128x128xf32>
      %c0_8 = arith.constant 0 : index
      %c0_9 = arith.constant 0 : index
      %15 = vector.load %arg4[%c0_8, %c0_9] : memref<1x128xf32, #tpu.memory_space<vmem>>, vector<1x128xf32>
      %16 = vector.broadcast %15 : vector<1x128xf32> to vector<128x128xf32>
      %17 = arith.addf %14, %16 : vector<128x128xf32>
      %cst_10 = arith.constant 0.000000e+00 : f32
      %18 = vector.broadcast %cst_10 : f32 to vector<128x128xf32>
      %19 = arith.maximumf %17, %18 : vector<128x128xf32>
      %20 = arith.truncf %19 : vector<128x128xf32> to vector<128x128xbf16>
      %c0_11 = arith.constant 0 : index
      %c0_12 = arith.constant 0 : index
      %21 = vector.load %arg5[%c0_11, %c0_12] : memref<128x32xbf16, #tpu.memory_space<vmem>>, vector<128x32xbf16>
      %cst_13 = arith.constant dense<0.000000e+00> : vector<128x32xf32>
      %22 = tpu.matmul %20, %21, %cst_13 {dimension_numbers = #tpu.dot_dimension_numbers<[1], [0], [0], [1], [0, 0, 1, 1], [], []>} : vector<128x128xbf16>, vector<128x32xbf16>, vector<128x32xf32> -> vector<128x32xf32>
      %c0_14 = arith.constant 0 : index
      %c0_15 = arith.constant 0 : index
      %23 = vector.load %arg6[%c0_14, %c0_15] : memref<1x32xf32, #tpu.memory_space<vmem>>, vector<1x32xf32>
      %24 = vector.broadcast %23 : vector<1x32xf32> to vector<128x32xf32>
      %25 = arith.addf %22, %24 : vector<128x32xf32>
      %c128_i32 = arith.constant 128 : i32
      %26 = arith.muli %arg1, %c128_i32 : i32
      %27 = tpu.assume_multiple %26, 128 : i32
      %28 = arith.index_cast %27 : i32 to index
      %c0_16 = arith.constant 0 : index
      %29 = vector.load %arg12[%28, %c0_16] : memref<256x32xf32, #tpu.memory_space<vmem>>, vector<128x32xf32>
      tpu.vector_store %arg12[%28, %c0_16], %25 {strides = array<i32>} : memref<256x32xf32, #tpu.memory_space<vmem>>, vector<128x32xf32>,
      %c1_i32_17 = arith.constant 1 : i32
      %30 = arith.cmpi slt, %arg1, %c1_i32_17 : i32
      %31 = arith.extui %30 : i1 to i32
      %c0_i32_18 = arith.constant 0 : i32
      %32 = arith.cmpi ne, %31, %c0_i32_18 : i32
      scf.if %32 {
        %c0_21 = arith.constant 0 : index
        %c0_22 = arith.constant 0 : index
        %36 = vector.load %arg13[%c0_21, %c0_22] : memref<2x32xf32, #tpu.memory_space<vmem>>, vector<1x32xf32>
        %cst_23 = arith.constant dense<0.000000e+00> : vector<32xf32>
        %37 = vector.multi_reduction <add>, %25, %cst_23 [0] : vector<128x32xf32> to vector<32xf32>
        %38 = vector.shape_cast %37 : vector<32xf32> to vector<1x32xf32>
        %39 = arith.addf %36, %38 : vector<1x32xf32>
        %c0_24 = arith.constant 0 : index
        %c0_25 = arith.constant 0 : index
        %40 = vector.load %arg13[%c0_24, %c0_25] : memref<2x32xf32, #tpu.memory_space<vmem>>, vector<1x32xf32>
        tpu.vector_store %arg13[%c0_24, %c0_25], %39 {strides = array<i32>} : memref<2x32xf32, #tpu.memory_space<vmem>>, vector<1x32xf32>,
        %c1 = arith.constant 1 : index
        %c0_26 = arith.constant 0 : index
        %41 = vector.load %arg13[%c1, %c0_26] : memref<2x32xf32, #tpu.memory_space<vmem>>, vector<1x32xf32>
        %42 = arith.mulf %25, %25 : vector<128x32xf32>
        %cst_27 = arith.constant dense<0.000000e+00> : vector<32xf32>
        %43 = vector.multi_reduction <add>, %42, %cst_27 [0] : vector<128x32xf32> to vector<32xf32>
        %44 = vector.shape_cast %43 : vector<32xf32> to vector<1x32xf32>
        %45 = arith.addf %41, %44 : vector<1x32xf32>
        %c1_28 = arith.constant 1 : index
        %c0_29 = arith.constant 0 : index
        %46 = vector.load %arg13[%c1_28, %c0_29] : memref<2x32xf32, #tpu.memory_space<vmem>>, vector<1x32xf32>
        tpu.vector_store %arg13[%c1_28, %c0_29], %45 {strides = array<i32>} : memref<2x32xf32, #tpu.memory_space<vmem>>, vector<1x32xf32>,
      } else {
      }
      %c1_i32_19 = arith.constant 1 : i32
      %33 = arith.cmpi eq, %arg1, %c1_i32_19 : i32
      %34 = arith.extui %33 : i1 to i32
      %c0_i32_20 = arith.constant 0 : i32
      %35 = arith.cmpi ne, %34, %c0_i32_20 : i32
      scf.if %35 {
        %36 = tpu.iota {dimensions = array<i32: 0>} : vector<128x1xi32>
        %c72_i32 = arith.constant 72 : i32
        %37 = vector.broadcast %c72_i32 : i32 to vector<128x1xi32>
        %38 = arith.cmpi slt, %36, %37 : vector<128x1xi32>
        %cst_21 = arith.constant 0.000000e+00 : f32
        %39 = vector.shape_cast %38 : vector<128x1xi1> to vector<128x1xi1>
        %40 = vector.broadcast %39 : vector<128x1xi1> to vector<128x32xi1>
        %41 = vector.broadcast %cst_21 : f32 to vector<128x32xf32>
        %42 = arith.select %40, %25, %41 : vector<128x32xi1>, vector<128x32xf32>
        %c0_22 = arith.constant 0 : index
        %c0_23 = arith.constant 0 : index
        %43 = vector.load %arg13[%c0_22, %c0_23] : memref<2x32xf32, #tpu.memory_space<vmem>>, vector<1x32xf32>
        %cst_24 = arith.constant dense<0.000000e+00> : vector<32xf32>
        %44 = vector.multi_reduction <add>, %42, %cst_24 [0] : vector<128x32xf32> to vector<32xf32>
        %45 = vector.shape_cast %44 : vector<32xf32> to vector<1x32xf32>
        %46 = arith.addf %43, %45 : vector<1x32xf32>
        %c0_25 = arith.constant 0 : index
        %c0_26 = arith.constant 0 : index
        %47 = vector.load %arg13[%c0_25, %c0_26] : memref<2x32xf32, #tpu.memory_space<vmem>>, vector<1x32xf32>
        tpu.vector_store %arg13[%c0_25, %c0_26], %46 {strides = array<i32>} : memref<2x32xf32, #tpu.memory_space<vmem>>, vector<1x32xf32>,
        %c1 = arith.constant 1 : index
        %c0_27 = arith.constant 0 : index
        %48 = vector.load %arg13[%c1, %c0_27] : memref<2x32xf32, #tpu.memory_space<vmem>>, vector<1x32xf32>
        %49 = arith.mulf %42, %42 : vector<128x32xf32>
        %cst_28 = arith.constant dense<0.000000e+00> : vector<32xf32>
        %50 = vector.multi_reduction <add>, %49, %cst_28 [0] : vector<128x32xf32> to vector<32xf32>
        %51 = vector.shape_cast %50 : vector<32xf32> to vector<1x32xf32>
        %52 = arith.addf %48, %51 : vector<1x32xf32>
        %c1_29 = arith.constant 1 : index
        %c0_30 = arith.constant 0 : index
        %53 = vector.load %arg13[%c1_29, %c0_30] : memref<2x32xf32, #tpu.memory_space<vmem>>, vector<1x32xf32>
        tpu.vector_store %arg13[%c1_29, %c0_30], %52 {strides = array<i32>} : memref<2x32xf32, #tpu.memory_space<vmem>>, vector<1x32xf32>,
      } else {
      }
    } else {
    }
    %c1_i32 = arith.constant 1 : i32
    %8 = arith.cmpi eq, %arg0, %c1_i32 : i32
    %9 = arith.extui %8 : i1 to i32
    %c0_i32_4 = arith.constant 0 : i32
    %10 = arith.cmpi ne, %9, %c0_i32_4 : i32
    scf.if %10 {
      %c0 = arith.constant 0 : index
      %c0_5 = arith.constant 0 : index
      %11 = vector.load %arg13[%c0, %c0_5] : memref<2x32xf32, #tpu.memory_space<vmem>>, vector<1x32xf32>
      %cst = arith.constant 5.000000e-03 : f32
      %12 = vector.broadcast %cst : f32 to vector<1x32xf32>
      %13 = arith.mulf %11, %12 : vector<1x32xf32>
      %c1 = arith.constant 1 : index
      %c0_6 = arith.constant 0 : index
      %14 = vector.load %arg13[%c1, %c0_6] : memref<2x32xf32, #tpu.memory_space<vmem>>, vector<1x32xf32>
      %cst_7 = arith.constant 5.000000e-03 : f32
      %15 = vector.broadcast %cst_7 : f32 to vector<1x32xf32>
      %16 = arith.mulf %14, %15 : vector<1x32xf32>
      %17 = arith.mulf %13, %13 : vector<1x32xf32>
      %18 = arith.subf %16, %17 : vector<1x32xf32>
      %c0_8 = arith.constant 0 : index
      %c0_9 = arith.constant 0 : index
      %19 = vector.load %arg7[%c0_8, %c0_9] : memref<1x32xf32, #tpu.memory_space<vmem>>, vector<1x32xf32>
      %cst_10 = arith.constant 9.99999974E-6 : f32
      %20 = vector.broadcast %cst_10 : f32 to vector<1x32xf32>
      %21 = arith.addf %18, %20 : vector<1x32xf32>
      %22 = math.rsqrt %21 : vector<1x32xf32>
      %23 = arith.mulf %19, %22 : vector<1x32xf32>
      %c0_11 = arith.constant 0 : index
      %c0_12 = arith.constant 0 : index
      %24 = vector.load %arg8[%c0_11, %c0_12] : memref<1x32xf32, #tpu.memory_space<vmem>>, vector<1x32xf32>
      %25 = arith.mulf %13, %23 : vector<1x32xf32>
      %26 = arith.subf %24, %25 : vector<1x32xf32>
      %c128_i32 = arith.constant 128 : i32
      %27 = arith.muli %arg1, %c128_i32 : i32
      %28 = tpu.assume_multiple %27, 128 : i32
      %29 = arith.index_cast %28 : i32 to index
      %c0_13 = arith.constant 0 : index
      %30 = vector.load %arg12[%29, %c0_13] : memref<256x32xf32, #tpu.memory_space<vmem>>, vector<128x32xf32>
      %31 = vector.broadcast %23 : vector<1x32xf32> to vector<128x32xf32>
      %32 = arith.mulf %30, %31 : vector<128x32xf32>
      %33 = vector.broadcast %26 : vector<1x32xf32> to vector<128x32xf32>
      %34 = arith.addf %32, %33 : vector<128x32xf32>
      %cst_14 = arith.constant 0.000000e+00 : f32
      %35 = vector.broadcast %cst_14 : f32 to vector<128x32xf32>
      %36 = arith.maximumf %34, %35 : vector<128x32xf32>
      %c0_15 = arith.constant 0 : index
      %c0_16 = arith.constant 0 : index
      %37 = vector.load %arg9[%c0_15, %c0_16] : memref<1x32xf32, #tpu.memory_space<vmem>>, vector<1x32xf32>
      %38 = vector.broadcast %37 : vector<1x32xf32> to vector<128x32xf32>
      %39 = arith.mulf %36, %38 : vector<128x32xf32>
      %cst_17 = arith.constant dense<0.000000e+00> : vector<128xf32>
      %40 = vector.multi_reduction <add>, %39, %cst_17 [1] : vector<128x32xf32> to vector<128xf32>
      %41 = vector.shape_cast %40 : vector<128xf32> to vector<128x1xf32>
      %c0_18 = arith.constant 0 : index
      %c0_19 = arith.constant 0 : index
      %42 = vector.load %arg10[%c0_18, %c0_19] : memref<1x1xf32, #tpu.memory_space<vmem>>, vector<1x1xf32>
      %43 = vector.broadcast %42 : vector<1x1xf32> to vector<128x1xf32>
      %44 = arith.addf %41, %43 : vector<128x1xf32>
      %c0_20 = arith.constant 0 : index
      %c0_21 = arith.constant 0 : index
      %45 = vector.load %arg11[%c0_20, %c0_21] : memref<128x1xf32, #tpu.memory_space<vmem>>, vector<128x1xf32>
      tpu.vector_store %arg11[%c0_20, %c0_21], %44 {strides = array<i32>} : memref<128x1xf32, #tpu.memory_space<vmem>>, vector<128x1xf32>,
    } else {
    }
    return
  }
  func.func @transform_0(%arg0: i32, %arg1: i32) -> (i32, i32) {
    %c1_i32 = arith.constant 1 : i32
    %0 = arith.subi %c1_i32, %arg0 : i32
    %1 = arith.muli %arg1, %0 : i32
    %c1_i32_0 = arith.constant 1 : i32
    %2 = arith.muli %c1_i32_0, %arg0 : i32
    %3 = arith.addi %1, %2 : i32
    %c0_i32 = arith.constant 0 : i32
    %c0_i32_1 = arith.constant 0 : i32
    return %3, %c0_i32 : i32, i32
  }
  func.func @transform_1(%arg0: i32, %arg1: i32) -> (i32, i32) {
    %c0_i32 = arith.constant 0 : i32
    %c0_i32_0 = arith.constant 0 : i32
    %c0_i32_1 = arith.constant 0 : i32
    return %c0_i32, %c0_i32_0 : i32, i32
  }
  func.func @transform_2(%arg0: i32, %arg1: i32) -> (i32, i32) {
    %c0_i32 = arith.constant 0 : i32
    %c0_i32_0 = arith.constant 0 : i32
    %c0_i32_1 = arith.constant 0 : i32
    return %c0_i32, %c0_i32_0 : i32, i32
  }
  func.func @transform_3(%arg0: i32, %arg1: i32) -> (i32, i32) {
    %c0_i32 = arith.constant 0 : i32
    %c0_i32_0 = arith.constant 0 : i32
    %c0_i32_1 = arith.constant 0 : i32
    return %c0_i32, %c0_i32_0 : i32, i32
  }
  func.func @transform_4(%arg0: i32, %arg1: i32) -> (i32, i32) {
    %c0_i32 = arith.constant 0 : i32
    %c0_i32_0 = arith.constant 0 : i32
    %c0_i32_1 = arith.constant 0 : i32
    return %c0_i32, %c0_i32_0 : i32, i32
  }
  func.func @transform_5(%arg0: i32, %arg1: i32) -> (i32, i32) {
    %c0_i32 = arith.constant 0 : i32
    %c0_i32_0 = arith.constant 0 : i32
    %c0_i32_1 = arith.constant 0 : i32
    return %c0_i32, %c0_i32_0 : i32, i32
  }
  func.func @transform_6(%arg0: i32, %arg1: i32) -> (i32, i32) {
    %c0_i32 = arith.constant 0 : i32
    %c0_i32_0 = arith.constant 0 : i32
    %c0_i32_1 = arith.constant 0 : i32
    return %c0_i32, %c0_i32_0 : i32, i32
  }
  func.func @transform_7(%arg0: i32, %arg1: i32) -> (i32, i32) {
    %c0_i32 = arith.constant 0 : i32
    %c0_i32_0 = arith.constant 0 : i32
    %c0_i32_1 = arith.constant 0 : i32
    return %c0_i32, %c0_i32_0 : i32, i32
  }
  func.func @transform_8(%arg0: i32, %arg1: i32) -> (i32, i32) {
    %c0_i32 = arith.constant 0 : i32
    %c0_i32_0 = arith.constant 0 : i32
    %c0_i32_1 = arith.constant 0 : i32
    return %c0_i32, %c0_i32_0 : i32, i32
  }
  func.func @transform_9(%arg0: i32, %arg1: i32) -> (i32, i32) {
    %0 = arith.muli %arg1, %arg0 : i32
    %c0_i32 = arith.constant 0 : i32
    %c0_i32_0 = arith.constant 0 : i32
    return %0, %c0_i32 : i32, i32
  }
}

</mosaic_0001>

<bundles_post_ra>
// kernel: tpu_custom_call.1
= control target key start
LH: loop header
LB: loop body
LE: loop exit
PB: predicated region body
PF: predicated region fallthrough
CT: control target
= control target key end

     0   :  { %s2830_s0 = inlined_call_operand.hbm [shape: f32[200,128], index: 0, kind: input, shape index: {}]   ;;  %s2831_s1 = inlined_call_operand.vmem [shape: bf16[128,128], index: 1, kind: input, shape index: {}]   ;;  %s2832_s2 = inlined_call_operand.vmem [shape: f32[1,128], index: 2, kind: input, shape index: {}]   ;;  %s2833_s3 = inlined_call_operand.vmem [shape: bf16[128,32], index: 3, kind: input, shape index: {}]   ;;  %s2834_s4 = inlined_call_operand.vmem [shape: f32[1,32], index: 4, kind: input, shape index: {}]   ;;  %s2835_s5 = inlined_call_operand.vmem [shape: f32[1,32], index: 5, kind: input, shape index: {}]   ;;  %s2836_s6 = inlined_call_operand.vmem [shape: f32[1,32], index: 6, kind: input, shape index: {}]   ;;  %s2837_s7 = inlined_call_operand.vmem [shape: f32[1,32], index: 7, kind: input, shape index: {}]   ;;  %s2838_s8 = inlined_call_operand.<no memory space> [shape: f32[1,1], index: 8, kind: input, shape index: {}]   ;;  %s2839_s9 = inlined_call_operand.vmem [shape: f32[200,1], index: 9, kind: output, shape index: {}]  }
   0x1   :  { %2842 = sst [smem:[#allocation11_spill]] %s2835_s5  ;;  %v14_v0 = vstv %s2838_s8 }
   0x2   :  { %2843 = sst [smem:[#allocation12_spill]] %s2836_s6  ;;  %15 = vst [vmem:[#allocation4] sm:$0x1] %v14_v0 }
   0x3   :  { %2844 = sst [smem:[#allocation13_spill]] %s2837_s7 }
   0x4   :  { %2845 = sst [smem:[#allocation14_spill]] %s2839_s9 }
   0x5   :  { %16 = vsyncpa [#allocation6], 0 }
   0x6   :  { %18 = vsyncpa [#allocation6 + $0x1], 0  ;;  %s2155_s11 = smov 0   ;;  %s2157_s12 = smov 0  }
   0x7   :  { %s2159_s13 = smov 0   ;;  %s2161_s14 = smov 0  }
   0x8   :  { %s2163_s15 = smov 0   ;;  %s2165_s16 = smov 0  }
   0x9   :  { %s2167_s17 = smov 0   ;;  %s2169_s18 = smov 0  }
   0xa   :  { %s2171_s8 = smov 0   ;;  %s2173_s19 = smov 0  }
   0xb LB: > { %2846 = sst [smem:[#allocation9_spill]] %s2060_s8  ;;  %s1601_s20 = sadd.s32 4294967295, %s2064_s19   ;;  %s2064_s19 = sphi %s2173_s19, %s24_s19   ;;  %s2060_s8 = sphi %s2171_s8, %s2859_s8   ;;  %s2056_s18 = sphi %s2169_s18, %s2866_s18   ;;  %s2052_s17 = sphi %s2167_s17, %s2858_s17   ;;  %s2048_s16 = sphi %s2165_s16, %s2865_s16   ;;  %s2044_s15 = sphi %s2163_s15, %s2864_s15   ;;  %s2040_s14 = sphi %s2161_s14, %s2863_s14   ;;  %s2036_s13 = sphi %s2159_s13, %s2862_s13   ;;  %s2032_s12 = sphi %s2157_s12, %s2861_s12   ;;  %s2028_s11 = sphi %s2155_s11, %s2860_s11  }
   0xc   : > { %s33_s21 = sadd.s32 1, %s2056_s18  ;;  %s36_s22 = sadd.s32 1, %s2060_s8 }
   0xd   : > { %p34_p0 = scmp.ge.s32.totalorder %s33_s21, 2  ;;  %s40_s23 = ssub.s32 1, %s2060_s8 }
   0xe   : > { %s49_s24 = sadd.s32 1, %s2044_s15  ;;  %s41_s25 = smul.u32 %s2056_s18, %s40_s23 }
   0xf   : > { %s2868_s21 = smov (%p34_p0, %s33_s21), 0  ;;  %s2870_s22 = smov (!%p34_p0, %s36_s22), %s2060_s8 }
  0x10   : > { %p56_p1 = scmp.ne.s32.totalorder %s2044_s15, %s2040_s14  ;;  %p38_p2 = scmp.ge.s32.totalorder %s2870_s22, 2 }
  0x11   : > { %p57_p3 = scmp.eq.s32.totalorder %s2064_s19, 0  ;;  %s2216_s26 = sadd.s32 %s2060_s8, %s41_s25 }
  0x12   : > { %p62_p4 = scmp.ne.s32.totalorder %s2040_s14, %s2036_s13  ;;  %s2872_s22 = smov (%p38_p2, %s2870_s22), 0 }
  0x13   : > { %2847 = sst [smem:[#allocation10_spill]] %s2872_s22  ;;  %p2221_p5 = por %p57_p3, %p56_p1 }
  0x14   : > { %p63_p6 = scmp.eq.s32.totalorder %s1601_s20, 0  ;;  %s43_s28 = ssub.s32 1, %s2872_s22 }
  0x15   : > { %s240_s29 = smul.u32 %s2056_s18, %s2060_s8  ;;  %s245_s23 = sadd.s32 1, %s2032_s12 }
  0x16   : > { %s44_s30 = smul.u32 %s43_s28, %s2868_s21  ;;  %p2229_p7 = por %p63_p6, %p62_p4 }
  0x17   : > { %s241_s13 = smul.u32 %s2872_s22, %s2868_s21  ;;  %p255_p8 = scmp.ne.s32.totalorder %s2032_s12, %s2028_s11 }
  0x18   : > { %s45_s25 = sadd.s32 %s44_s30, %s2872_s22  ;;  %p256_p11 = scmp.eq.s32.totalorder %s1601_s20, 3 }
  0x19   : > { %s46_s9 = ssub.s32 %s2216_s26, %s45_s25  ;;  %s242_s7 = ssub.s32 %s240_s29, %s241_s13 }
  0x1a   : > { %p47_p9 = scmp.eq.s32.totalorder %s46_s9, 0  ;;  %p243_p10 = scmp.eq.s32.totalorder %s242_s7, 0 }
  0x1b   : > { %p2246_p12 = por %p256_p11, %p255_p8  ;;  %p1604_p13 = scmp.ge.s32.totalorder %s2064_s19, 4 }
  0x1c   : > { %s2241_s6 = scalar_select %p47_p9, %s2044_s15, %s49_s24  }
  0x1d   : > { %s2244_s5 = scalar_select %p243_p10, %s2032_s12, %s245_s23  }
  0x1e   : > { %302 = sbr.rel (%p1604_p13) target bundleno = 67 (0x43), region = 48 }
  0x23   : > { %305 = sbr.rel (!%p2221_p5) target bundleno = 67 (0x43), region = 52  ;;  %s306_s28 = sand.u32 (%p2221_p5), 1, %s2044_s15  }
  0x24   : > { %s1606_s9 = sshll.u32 (%p2221_p5), %s2216_s26, 4  ;;  %s1605_s7 = sshll.u32 (%p2221_p5), %s306_s28, 7 }
  0x25   : > { %s315_s20 = ssub.s32 (%p2221_p5), 25, %s1606_s9  ;;  %s2258_s30 = scalar_lea.sflag (%p2221_p5), [#allocation6], %s306_s28 }
  0x26   : > { %p316_p0 = scmp.lt.s32.totalorder (%p2221_p5), %s315_s20, 16  ;;  %s310_s13 = scalar_lea.vmem (%p2221_p5), [#allocation5], %s1605_s7 }
  0x28   : > { %s2874_s20 = smov (!%p316_p0, %s315_s20), 16 }
  0x29   : > { %s2255_s24 = sshll.u32 %s2874_s20, 7 }
  0x2a   : > { %s320_s29 = ssub.s32 2048, %s2255_s24 }
  0x2b   : > { %321 = vsyncadd %s2258_s30, %s320_s29  ;;  %p1608_p1 = scmp.ne.s32.totalorder %s2255_s24, 0  ;;  %s1658_s27 = sshll.u32 %s2216_s26, 11 }
  0x2c   : > { %s2266_s9 = scalar_lea.hbm %s2830_s0, %s1658_s27  ;;  %s326_s20 = sshll.u32 %s310_s13, 4  ;;  %s2268_s20 = int_to_ptr.vmem [resolvable:$true] %s326_s20 }
  0x2d   : > { %s1924_s28 = scalar_lea.hbm %s2266_s9, %s2255_s24  ;;  %s1928_s22 = scalar_lea.hbm %s2830_s0, 3200 }
  0x2e   : > { %p1925_p2 = scmp.ne.s32.totalorder %s2266_s9, %s1924_s28  ;;  %p1930_p5 = scmp.lt.s32.totalorder %s1928_s22, %s1924_s28 }
  0x30   : > { %p1926_p3 = pnand %p1925_p2, %p1608_p1 }
  0x32   : > { %p1927_p4 = pneg %p1926_p3 }
  0x34   : > { %p1932_p6 = pnand %p1930_p5, %p1927_p4 }
  0x36   : > { %1935 = shalt.err (!%p1932_p6)
}
  0x37   : > { %s1936_s26 = scalar_lea.vmem %s2268_s20, %s2255_s24  ;;  %s2098_s13 = smov [#allocation5]  }
  0x38   : > { %p1937_p8 = scmp.ne.s32.totalorder %s2268_s20, %s1936_s26  ;;  %s1940_s27 = sshll.u32 %s2098_s13, 4  ;;  %s1941_s27 = int_to_ptr.vmem [resolvable:$false] %s1940_s27 }
  0x39   : > { %s1942_s23 = scalar_lea.vmem %s1941_s27, 4096  ;;  %p1943_p11 = scmp.lt.s32.totalorder %s2268_s20, %s1941_s27 }
  0x3a   : > { %p1938_p9 = pnand %p1937_p8, %p1608_p1  ;;  %p1944_p13 = scmp.lt.s32.totalorder %s1942_s23, %s1936_s26 }
  0x3c   : > { %p1939_p10 = pneg %p1938_p9  ;;  %p1945_p0 = por %p1944_p13, %p1943_p11 }
  0x3e   : > { %p1946_p2 = pnand %p1945_p0, %p1939_p10 }
  0x40   : > { %1949 = shalt.err (!%p1946_p2)
}
  0x41   : > { %s2099_s22 = smov 128   ;;  %s2100_s25 = smov 8  }
  0x42   : > { %332 = dma.hbm_to_vmem [thread:$0]  (%p1608_p1), %s2266_s9, %s2255_s24, %s2268_s20, %s2258_s30, %s2099_s22, %s2099_s22, %s2100_s25  }
  0x43 PF: > { %p1612_p3 = scmp.ge.s32.totalorder %s2064_s19, 1  ;;  %p334_p4 = scmp.lt.s32.totalorder %s2064_s19, 5 }
  0x45   : > { %p335_p5 = pnand %p1612_p3, %p334_p4 }
  0x46   : > { %s340_s28 = sand.u32 (!%p335_p5), 1, %s2040_s14  }
  0x47   : > { %338 = sbr.rel (%p335_p5) target bundleno = 914 (0x392), region = 56  ;;  %s1613_s7 = sshll.u32 (!%p335_p5), %s340_s28, 7 }
  0x48   : > { %s341_s29 = scalar_lea.sflag (!%p335_p5), [#allocation6], %s340_s28  ;;  %s2293_s26 = scalar_lea.vmem (!%p335_p5), [#allocation5], %s1613_s7 }
  0x4c   : > { %2023 = dma.done.wait (%p2229_p7), %s341_s29, 2048  }
  0x4d   : > { %2025 = vsyncadd (%p2229_p7), %s341_s29, 4294965248  ;;  %s375_s24 = sand.u32 1, %s2028_s11   ;;  %p393_p1 = scmp.eq.s32.totalorder %s2052_s17, 0 }
  0x4e   : > { %s1614_s30 = sshll.u32 %s375_s24, 7  ;;  %p394_p6 = scmp.eq.s32.totalorder %s2048_s16, 0 }
  0x4f   : > { %s2302_s9 = scalar_lea.vmem [#allocation7], %s1614_s30  }
  0x50   : > { %p395_p8 = pnand %p394_p6, %p393_p1 }
  0x52   : > { %398 = sbr.rel (%p395_p8) target bundleno = 89 (0x59), region = 64 }
  0x57   : > { %vm399_vm0 = vcmask 254976   ;;  %v2101_v1 = vmov 0.0  }
  0x58   : > { %400 = vst.msk [vmem:[#allocation3] sm:$0x3] %vm399_vm0, %v2101_v1 }
  0x59 PF: > { %p1615_p9 = scmp.ne.s32.totalorder %s2052_s17, 0 }
  0x5a   : > { %s1634_s25 = sshll.u32 (!%p1615_p9), %s2048_s16, 7  ;;  %p1635_p7 = scmp.ge.s32.totalorder (!%p1615_p9), %s2048_s16, 1 }
  0x5b   : > { %403 = sbr.rel (%p1615_p9) target bundleno = 652 (0x28c), region = 68  ;;  %s2378_s29 = scalar_lea.vmem (!%p1615_p9), [#allocation2], %s1634_s25 }
  0x60   : > { %v1906_v2 = vld [vmem:[%s2831_s1 + $0x38] sm:$0xff]   ;;  %v1907_v3 = vld [vmem:[%s2831_s1 + $0x30] sm:$0xff]   ;;  %v1908_v4 = vld [vmem:[%s2831_s1 + $0x28] sm:$0xff]   ;;  %vm790_vm1 = vcmask 261120  }
  0x61   : > { %1694 = vmatprep.subr.bf16.mxu0 %v1906_v2  ;;  %v1909_v5 = vld [vmem:[%s2831_s1 + $0x20] sm:$0xff]   ;;  %v405_v7 = vld [vmem:[%s2293_s26 + $0x8] sm:$0xff]  ;;  %v1910_v9 = vld [vmem:[%s2831_s1 + $0x18] sm:$0xff]  }
  0x62   : > { %1695 = vmatpush3.bf16.msra.mxu0 %v1906_v2  ;;  %v404_v6 = vld [vmem:[%s2293_s26] sm:$0xff]  ;;  %v1914_v10 = vld [vmem:[%s2833_s3 + $0x38] sm:$0xff]   ;;  %v1915_v11 = vld [vmem:[%s2833_s3 + $0x30] sm:$0xff]  }
  0x63   : > { %1696 = vmatprep.subr.bf16.mxu0 %v1907_v3  ;;  %v420_v8 = vpack.c.bf16 %v405_v7, %v404_v6  ;;  %v1911_v12 = vld [vmem:[%s2831_s1 + $0x10] sm:$0xff]   ;;  %1726 = vmatprep.subr.bf16.mxu1 %v1914_v10  ;;  %v1916_v13 = vld [vmem:[%s2833_s3 + $0x28] sm:$0xff]   ;;  %v1917_v15 = vld [vmem:[%s2833_s3 + $0x20] sm:$0xff]  }
  0x64   : > { %1727 = vmatpush3.bf16.msra.mxu1 %v1914_v10  ;;  %v1912_v14 = vld [vmem:[%s2831_s1 + $0x8] sm:$0xff]   ;;  %v1913_v16 = vld [vmem:[%s2831_s1] sm:$0xff]   ;;  %v1918_v17 = vld [vmem:[%s2833_s3 + $0x18] sm:$0xff]  }
  0x65   : > { %1710 = vmatprep.mubr.bf16.mxu0 %v420_v8  ;;  %1728 = vmatprep.subr.bf16.mxu1 %v1915_v11  ;;  %v406_v18 = vld [vmem:[%s2293_s26 + $0x10] sm:$0xff]  ;;  %v407_v19 = vld [vmem:[%s2293_s26 + $0x18] sm:$0xff]  ;;  %v408_v20 = vld [vmem:[%s2293_s26 + $0x20] sm:$0xff] }
  0x66   : > { %1697 = vmatpush3.bf16.msra.mxu0 %v1907_v3  ;;  %v409_v21 = vld [vmem:[%s2293_s26 + $0x28] sm:$0xff]  ;;  %v421_v22 = vpack.c.bf16 %v407_v19, %v406_v18  ;;  %v410_v24 = vld [vmem:[%s2293_s26 + $0x30] sm:$0xff]  ;;  %v411_v25 = vld [vmem:[%s2293_s26 + $0x38] sm:$0xff] }
  0x67   : > { %1698 = vmatprep.subr.bf16.mxu0 %v1908_v4  ;;  %v422_v23 = vpack.c.bf16 %v409_v21, %v408_v20  ;;  %v412_v26 = vld [vmem:[%s2293_s26 + $0x40] sm:$0xff]  ;;  %v413_v27 = vld [vmem:[%s2293_s26 + $0x48] sm:$0xff]  ;;  %v423_v28 = vpack.c.bf16 %v411_v25, %v410_v24  ;;  %v414_v30 = vld [vmem:[%s2293_s26 + $0x50] sm:$0xff] }
  0x68   : > { %1729 = vmatpush3.bf16.msra.mxu1 %v1915_v11  ;;  %v424_v29 = vpack.c.bf16 %v413_v27, %v412_v26  ;;  %v415_v31 = vld [vmem:[%s2293_s26 + $0x58] sm:$0xff]  ;;  %v416_v32 = vld [vmem:[%s2293_s26 + $0x60] sm:$0xff]  ;;  %v417_v33 = vld [vmem:[%s2293_s26 + $0x68] sm:$0xff] }
  0x69   : > { %1730 = vmatprep.subr.bf16.mxu1 %v1916_v13  ;;  %v425_v34 = vpack.c.bf16 %v415_v31, %v414_v30  ;;  %v426_v35 = vpack.c.bf16 %v417_v33, %v416_v32  ;;  %v418_v36 = vld [vmem:[%s2293_s26 + $0x70] sm:$0xff]  ;;  %v419_v37 = vld [vmem:[%s2293_s26 + $0x78] sm:$0xff]  ;;  %v1920_v40 = vld [vmem:[%s2833_s3 + $0x8] sm:$0xff]  }
  0x6a   : > { %1699 = vmatpush3.bf16.msra.mxu0 %v1908_v4  ;;  %v427_v38 = vpack.c.bf16 %v419_v37, %v418_v36  ;;  %v1919_v39 = vld [vmem:[%s2833_s3 + $0x10] sm:$0xff]   ;;  %v1921_v41 = vld [vmem:[%s2833_s3] sm:$0xff]  }
  0x6b   : > { %1700 = vmatprep.subr.bf16.mxu0 %v1909_v5  ;;  %v1616_v44 = vld [vmem:[%s2832_s2] ss:$0 sm:$0xff] }
  0x6c   : > { %1731 = vmatpush3.bf16.msra.mxu1 %v1916_v13 }
  0x6d   : > { %1732 = vmatprep.subr.bf16.mxu1 %v1917_v15 }
  0x6e   : > { %1701 = vmatpush3.bf16.msra.mxu0 %v1909_v5 }
  0x6f   : > { %1702 = vmatprep.subr.bf16.mxu0 %v1910_v9 }
  0x70   : > { %1733 = vmatpush3.bf16.msra.mxu1 %v1917_v15 }
  0x71   : > { %1734 = vmatprep.subr.bf16.mxu1 %v1918_v17 }
  0x72   : > { %1703 = vmatpush3.bf16.msra.mxu0 %v1910_v9 }
  0x73   : > { %1704 = vmatprep.subr.bf16.mxu0 %v1911_v12 }
  0x74   : > { %1735 = vmatpush3.bf16.msra.mxu1 %v1918_v17 }
  0x75   : > { %1736 = vmatprep.subr.bf16.mxu1 %v1919_v39 }
  0x76   : > { %1705 = vmatpush3.bf16.msra.mxu0 %v1911_v12 }
  0x77   : > { %1706 = vmatprep.subr.bf16.mxu0 %v1912_v14 }
  0x78   : > { %1737 = vmatpush3.bf16.msra.mxu1 %v1919_v39 }
  0x79   : > { %1738 = vmatprep.subr.bf16.mxu1 %v1920_v40 }
  0x7a   : > { %1707 = vmatpush3.bf16.msra.mxu0 %v1912_v14 }
  0x7b   : > { %1708 = vmatprep.subr.bf16.mxu0 %v1913_v16 }
  0x7c   : > { %1739 = vmatpush3.bf16.msra.mxu1 %v1920_v40 }
  0x7d   : > { %1740 = vmatprep.subr.bf16.mxu1 %v1921_v41 }
  0x7e   : > { %1709 = vmatpush3.bf16.msra.mxu0 %v1913_v16 }
  0x80   : > { %1741 = vmatpush3.bf16.msra.mxu1 %v1921_v41 }
  0x81   : > { %1711 = vmatmul.mubr.bf16.vlgmr.msra.gmra.mxu0 %v421_v22 }
  0x82   : > { %1714 = vmatprep.mubr.bf16.mxu0 %v422_v23 }
  0x89   : > { %1715 = vmatmul.mubr.bf16.gmra.mxu0 %v423_v28 }
  0x8a   : > { %1718 = vmatprep.mubr.bf16.mxu0 %v424_v29 }
  0x91   : > { %1719 = vmatmul.mubr.bf16.gmra.mxu0 %v425_v34 }
  0x92   : > { %1722 = vmatprep.mubr.bf16.mxu0 %v426_v35  ;;  %v1625_v35 = vld [vmem:[%s2834_s4] ss:$0 sm:$0xff] }
  0x99   : > { %1723 = vmatmul.mubr.bf16.gmra.mxu0 %v427_v38 }
 0x141   : > { %v1712_v42 = vpop.f32.mrf.mxu0 }
 0x142   : > { %v542_v48 = vadd.f32 %v1712_v42, %v1616_v44 }
 0x143   : > { %v533_v43 = vpop.f32.mrf.mxu0 }
 0x144   : > { %v534_v46 = vadd.f32 %v1616_v44, %v533_v43  ;;  %v598_v55 = vmax.f32 %v542_v48, 0.0 }
 0x145   : > { %v1713_v45 = vpop.f32.mrf.mxu0 }
 0x146   : > { %v545_v47 = vadd.f32 %v1713_v45, %v1616_v44  ;;  %v596_v53 = vmax.f32 %v534_v46, 0.0 }
 0x147   : > { %v536_v49 = vpop.f32.mrf.mxu0 }
 0x148   : > { %v537_v50 = vadd.f32 %v1616_v44, %v536_v49  ;;  %v599_v51 = vmax.f32 %v545_v47, 0.0 }
 0x149   : > { %v1716_v52 = vpop.f32.mrf.mxu0 }
 0x14a   : > { %v597_v54 = vmax.f32 %v537_v50, 0.0  ;;  %v613_v58 = vpack.c.bf16 %v599_v51, %v598_v55  ;;  %v558_v62 = vadd.f32 %v1716_v52, %v1616_v44 }
 0x14b   : > { %v549_v56 = vpop.f32.mrf.mxu0 }
 0x14c   : > { %v612_v57 = vpack.c.bf16 %v597_v54, %v596_v53  ;;  %v550_v60 = vadd.f32 %v1616_v44, %v549_v56  ;;  %v602_v5 = vmax.f32 %v558_v62, 0.0 }
 0x14d   : > { %v1717_v59 = vpop.f32.mrf.mxu0 }
 0x14e   : > { %v561_v61 = vadd.f32 %v1717_v59, %v1616_v44  ;;  %1742 = vmatprep.mubr.bf16.mxu1 %v612_v57  ;;  %v600_v3 = vmax.f32 %v550_v60, 0.0 }
 0x14f   : > { %v552_v63 = vpop.f32.mrf.mxu0  ;;  %1743 = vmatmul.mubr.bf16.vlgmr.msra.gmra.mxu1 %v613_v58 }
 0x150   : > { %v553_v0 = vadd.f32 %v1616_v44, %v552_v63  ;;  %v603_v1 = vmax.f32 %v561_v61, 0.0 }
 0x151   : > { %v1720_v2 = vpop.f32.mrf.mxu0 }
 0x152   : > { %v601_v4 = vmax.f32 %v553_v0, 0.0  ;;  %v615_v8 = vpack.c.bf16 %v603_v1, %v602_v5  ;;  %v574_v12 = vadd.f32 %v1720_v2, %v1616_v44 }
 0x153   : > { %v565_v6 = vpop.f32.mrf.mxu0 }
 0x154   : > { %v614_v7 = vpack.c.bf16 %v601_v4, %v600_v3  ;;  %v566_v10 = vadd.f32 %v1616_v44, %v565_v6  ;;  %v606_v19 = vmax.f32 %v574_v12, 0.0 }
 0x155   : > { %v1721_v9 = vpop.f32.mrf.mxu0 }
 0x156   : > { %v577_v11 = vadd.f32 %v1721_v9, %v1616_v44  ;;  %1746 = vmatprep.mubr.bf16.mxu1 %v614_v7  ;;  %v604_v17 = vmax.f32 %v566_v10, 0.0 }
 0x157   : > { %v568_v13 = vpop.f32.mrf.mxu0  ;;  %1747 = vmatmul.mubr.bf16.gmra.mxu1 %v615_v8 }
 0x158   : > { %v569_v14 = vadd.f32 %v1616_v44, %v568_v13  ;;  %v607_v15 = vmax.f32 %v577_v11, 0.0 }
 0x159   : > { %v1724_v16 = vpop.f32.mrf.mxu0 }
 0x15a   : > { %v605_v18 = vmax.f32 %v569_v14, 0.0  ;;  %v617_v22 = vpack.c.bf16 %v607_v15, %v606_v19  ;;  %v590_v26 = vadd.f32 %v1724_v16, %v1616_v44 }
 0x15b   : > { %v581_v20 = vpop.f32.mrf.mxu0 }
 0x15c   : > { %v616_v21 = vpack.c.bf16 %v605_v18, %v604_v17  ;;  %v582_v24 = vadd.f32 %v1616_v44, %v581_v20  ;;  %v610_v32 = vmax.f32 %v590_v26, 0.0 }
 0x15d   : > { %v1725_v23 = vpop.f32.mrf.mxu0 }
 0x15e   : > { %v593_v25 = vadd.f32 %v1725_v23, %v1616_v44  ;;  %1750 = vmatprep.mubr.bf16.mxu1 %v616_v21  ;;  %v608_v30 = vmax.f32 %v582_v24, 0.0 }
 0x15f   : > { %v584_v27 = vpop.f32.mrf.mxu0  ;;  %1751 = vmatmul.mubr.bf16.gmra.mxu1 %v617_v22 }
 0x160   : > { %v585_v28 = vadd.f32 %v1616_v44, %v584_v27  ;;  %v611_v29 = vmax.f32 %v593_v25, 0.0 }
 0x162   : > { %v609_v31 = vmax.f32 %v585_v28, 0.0  ;;  %v619_v34 = vpack.c.bf16 %v611_v29, %v610_v32 }
 0x164   : > { %v618_v33 = vpack.c.bf16 %v609_v31, %v608_v30 }
 0x166   : > { %1754 = vmatprep.mubr.bf16.mxu1 %v618_v33 }
 0x167   : > { %1755 = vmatmul.mubr.bf16.gmra.mxu1 %v619_v34 }
 0x20f   : > { %v1744_v36 = vpop.f32.mrf.mxu1 }
 0x210   : > { %v2376_v37 = vadd.f32 %v1744_v36, %v1625_v35 }
 0x211   : > { %v725_v38 = vpop.f32.mrf.mxu1 }
 0x212   : > { %793 = vst.msk [vmem:[%s2378_s29 + $0x10] sm:$0xff] %vm790_vm1, %v2376_v37  ;;  %v2383_v39 = vadd.f32 %v1625_v35, %v725_v38 }
 0x213   : > { %v1745_v40 = vpop.f32.mrf.mxu1 }
 0x214   : > { %791 = vst.msk [vmem:[%s2378_s29] sm:$0xff] %vm790_vm1, %v2383_v39  ;;  %v2388_v41 = vadd.f32 %v1745_v40, %v1625_v35 }
 0x215   : > { %v728_v42 = vpop.f32.mrf.mxu1 }
 0x216   : > { %794 = vst.msk [vmem:[%s2378_s29 + $0x18] sm:$0xff] %vm790_vm1, %v2388_v41  ;;  %v2393_v43 = vadd.f32 %v1625_v35, %v728_v42 }
 0x217   : > { %v1748_v44 = vpop.f32.mrf.mxu1 }
 0x218   : > { %792 = vst.msk [vmem:[%s2378_s29 + $0x8] sm:$0xff] %vm790_vm1, %v2393_v43  ;;  %v2398_v45 = vadd.f32 %v1748_v44, %v1625_v35 }
 0x219   : > { %v741_v46 = vpop.f32.mrf.mxu1 }
 0x21a   : > { %797 = vst.msk [vmem:[%s2378_s29 + $0x30] sm:$0xff] %vm790_vm1, %v2398_v45  ;;  %v2403_v47 = vadd.f32 %v1625_v35, %v741_v46 }
 0x21b   : > { %v1749_v48 = vpop.f32.mrf.mxu1 }
 0x21c   : > { %795 = vst.msk [vmem:[%s2378_s29 + $0x20] sm:$0xff] %vm790_vm1, %v2403_v47  ;;  %v2408_v49 = vadd.f32 %v1749_v48, %v1625_v35 }
 0x21d   : > { %v744_v50 = vpop.f32.mrf.mxu1 }
 0x21e   : > { %798 = vst.msk [vmem:[%s2378_s29 + $0x38] sm:$0xff] %vm790_vm1, %v2408_v49  ;;  %v2413_v51 = vadd.f32 %v1625_v35, %v744_v50 }
 0x21f   : > { %v1752_v52 = vpop.f32.mrf.mxu1 }
 0x220   : > { %796 = vst.msk [vmem:[%s2378_s29 + $0x28] sm:$0xff] %vm790_vm1, %v2413_v51  ;;  %v2418_v53 = vadd.f32 %v1752_v52, %v1625_v35 }
 0x221   : > { %v757_v54 = vpop.f32.mrf.mxu1 }
 0x222   : > { %801 = vst.msk [vmem:[%s2378_s29 + $0x50] sm:$0xff] %vm790_vm1, %v2418_v53  ;;  %v2423_v55 = vadd.f32 %v1625_v35, %v757_v54 }
 0x223   : > { %v1753_v56 = vpop.f32.mrf.mxu1 }
 0x224   : > { %799 = vst.msk [vmem:[%s2378_s29 + $0x40] sm:$0xff] %vm790_vm1, %v2423_v55  ;;  %v2428_v57 = vadd.f32 %v1753_v56, %v1625_v35 }
 0x225   : > { %v760_v58 = vpop.f32.mrf.mxu1 }
 0x226   : > { %802 = vst.msk [vmem:[%s2378_s29 + $0x58] sm:$0xff] %vm790_vm1, %v2428_v57  ;;  %v761_v59 = vadd.f32 %v1625_v35, %v760_v58 }
 0x227   : > { %v1756_v60 = vpop.f32.mrf.mxu1 }
 0x228   : > { %800 = vst.msk [vmem:[%s2378_s29 + $0x48] sm:$0xff] %vm790_vm1, %v761_v59  ;;  %v2435_v61 = vadd.f32 %v1756_v60, %v1625_v35 }
 0x229   : > { %v773_v62 = vpop.f32.mrf.mxu1 }
 0x22a   : > { %805 = vst.msk [vmem:[%s2378_s29 + $0x70] sm:$0xff] %vm790_vm1, %v2435_v61  ;;  %v2440_v63 = vadd.f32 %v1625_v35, %v773_v62 }
 0x22b   : > { %v1757_v0 = vpop.f32.mrf.mxu1 }
 0x22c   : > { %803 = vst.msk [vmem:[%s2378_s29 + $0x60] sm:$0xff] %vm790_vm1, %v2440_v63  ;;  %v2445_v1 = vadd.f32 %v1757_v0, %v1625_v35  ;;  %810 = sbr.rel (%p1635_p7) target bundleno = 610 (0x262), region = 72 }
 0x22d   : > { %v776_v2 = vpop.f32.mrf.mxu1 }
 0x22e   : > { %806 = vst.msk [vmem:[%s2378_s29 + $0x78] sm:$0xff] %vm790_vm1, %v2445_v1  ;;  %v2450_v3 = vadd.f32 %v1625_v35, %v776_v2 }
 0x230   : > { %804 = vst.msk [vmem:[%s2378_s29 + $0x68] sm:$0xff] %vm790_vm1, %v2450_v3 }
 0x231   : > { %v812_v4 = vsel %vm790_vm1, %v2383_v39, 0.0  ;;  %v813_v5 = vsel %vm790_vm1, %v2393_v43, 0.0  ;;  %v815_v6 = vsel %vm790_vm1, %v2376_v37, 0.0  ;;  %v817_v8 = vsel %vm790_vm1, %v2388_v41, 0.0 }
 0x232   : > { %v814_v7 = vadd.f32 %v813_v5, %v812_v4  ;;  %v819_v10 = vsel %vm790_vm1, %v2403_v47, 0.0  ;;  %v853_v12 = vmul.f32 %v2383_v39, %v2383_v39  ;;  %v854_v13 = vmul.f32 %v2393_v43, %v2393_v43 }
 0x233   : > { %v821_v14 = vsel %vm790_vm1, %v2413_v51, 0.0  ;;  %v855_v15 = vmul.f32 %v2376_v37, %v2376_v37  ;;  %v856_v17 = vmul.f32 %v2388_v41, %v2388_v41  ;;  %v823_v18 = vsel %vm790_vm1, %v2398_v45, 0.0 }
 0x234   : > { %v816_v9 = vadd.f32 %v815_v6, %v814_v7  ;;  %v857_v20 = vmul.f32 %v2403_v47, %v2403_v47  ;;  %v869_v21 = vsel %vm790_vm1, %v853_v12, 0.0  ;;  %v870_v22 = vsel %vm790_vm1, %v854_v13, 0.0 }
 0x235   : > { %v825_v23 = vsel %vm790_vm1, %v2408_v49, 0.0  ;;  %v871_v24 = vadd.f32 %v870_v22, %v869_v21  ;;  %v872_v25 = vsel %vm790_vm1, %v855_v15, 0.0  ;;  %v858_v27 = vmul.f32 %v2413_v51, %v2413_v51 }
 0x236   : > { %v818_v11 = vadd.f32 %v817_v8, %v816_v9  ;;  %v874_v28 = vsel %vm790_vm1, %v856_v17, 0.0  ;;  %v827_v29 = vsel %vm790_vm1, %v2423_v55, 0.0  ;;  %v859_v32 = vmul.f32 %v2398_v45, %v2398_v45 }
 0x237   : > { %v873_v30 = vadd.f32 %v872_v25, %v871_v24  ;;  %v876_v33 = vsel %vm790_vm1, %v857_v20, 0.0  ;;  %v829_v34 = vsel %vm790_vm1, %v761_v59, 0.0  ;;  %v860_v38 = vmul.f32 %v2408_v49, %v2408_v49 }
 0x238   : > { %v820_v16 = vadd.f32 %v819_v10, %v818_v11  ;;  %v878_v40 = vsel %vm790_vm1, %v858_v27, 0.0  ;;  %v831_v42 = vsel %vm790_vm1, %v2418_v53, 0.0  ;;  %v861_v48 = vmul.f32 %v2423_v55, %v2423_v55 }
 0x239   : > { %v875_v35 = vadd.f32 %v874_v28, %v873_v30  ;;  %v880_v50 = vsel %vm790_vm1, %v859_v32, 0.0  ;;  %v833_v52 = vsel %vm790_vm1, %v2428_v57, 0.0  ;;  %v862_v58 = vmul.f32 %v761_v59, %v761_v59 }
 0x23a   : > { %v822_v19 = vadd.f32 %v821_v14, %v820_v16  ;;  %v882_v60 = vsel %vm790_vm1, %v860_v38, 0.0  ;;  %v835_v62 = vsel %vm790_vm1, %v2440_v63, 0.0  ;;  %v863_v4 = vmul.f32 %v2418_v53, %v2418_v53 }
 0x23b   : > { %v877_v44 = vadd.f32 %v876_v33, %v875_v35  ;;  %v884_v5 = vsel %vm790_vm1, %v861_v48, 0.0  ;;  %v837_v6 = vsel %vm790_vm1, %v2450_v3, 0.0  ;;  %v864_v59 = vmul.f32 %v2428_v57, %v2428_v57  ;;  %v811_v33 = vld [vmem:[#allocation3] sm:$0x1] }
 0x23c   : > { %v824_v26 = vadd.f32 %v823_v18, %v822_v19  ;;  %v886_v9 = vsel %vm790_vm1, %v862_v58, 0.0  ;;  %v839_v10 = vsel %vm790_vm1, %v2435_v61, 0.0  ;;  %v865_v53 = vmul.f32 %v2440_v63, %v2440_v63 }
 0x23d   : > { %v879_v54 = vadd.f32 %v878_v40, %v877_v44  ;;  %v888_v13 = vsel %vm790_vm1, %v863_v4, 0.0  ;;  %v841_v14 = vsel %vm790_vm1, %v2445_v1, 0.0  ;;  %v866_v57 = vmul.f32 %v2450_v3, %v2450_v3  ;;  %v852_v44 = vld [vmem:[#allocation3 + $0x1] sm:$0x1] }
 0x23e   : > { %v826_v31 = vadd.f32 %v825_v23, %v824_v26  ;;  %v890_v17 = vsel %vm790_vm1, %v864_v59, 0.0  ;;  %v867_v20 = vmul.f32 %v2435_v61, %v2435_v61  ;;  %v892_v21 = vsel %vm790_vm1, %v865_v53, 0.0 }
 0x23f   : > { %v881_v0 = vadd.f32 %v880_v50, %v879_v54  ;;  %v868_v23 = vmul.f32 %v2445_v1, %v2445_v1  ;;  %v894_v24 = vsel %vm790_vm1, %v866_v57, 0.0  ;;  %vm850_vm2 = vcmask 253952  }
 0x240   : > { %v828_v36 = vadd.f32 %v827_v29, %v826_v31  ;;  %v896_v3 = vsel %vm790_vm1, %v867_v20, 0.0 }
 0x241   : > { %v883_v7 = vadd.f32 %v882_v60, %v881_v0  ;;  %v898_v29 = vsel %vm790_vm1, %v868_v23, 0.0 }
 0x242   : > { %v830_v46 = vadd.f32 %v829_v34, %v828_v36 }
 0x243   : > { %v885_v11 = vadd.f32 %v884_v5, %v883_v7 }
 0x244   : > { %v832_v56 = vadd.f32 %v831_v42, %v830_v46 }
 0x245   : > { %v887_v15 = vadd.f32 %v886_v9, %v885_v11 }
 0x246   : > { %v834_v2 = vadd.f32 %v833_v52, %v832_v56 }
 0x247   : > { %v889_v18 = vadd.f32 %v888_v13, %v887_v15 }
 0x248   : > { %v836_v8 = vadd.f32 %v835_v62, %v834_v2 }
 0x249   : > { %v891_v63 = vadd.f32 %v890_v17, %v889_v18 }
 0x24a   : > { %v838_v12 = vadd.f32 %v837_v6, %v836_v8 }
 0x24b   : > { %v893_v25 = vadd.f32 %v892_v21, %v891_v63 }
 0x24c   : > { %v840_v16 = vadd.f32 %v839_v10, %v838_v12 }
 0x24d   : > { %v895_v27 = vadd.f32 %v894_v24, %v893_v25 }
 0x24e   : > { %v842_v19 = vadd.f32 %v841_v14, %v840_v16 }
 0x24f   : > { %v897_v30 = vadd.f32 %v896_v3, %v895_v27 }
 0x250   : > { %v843_v22 = vrot.slane %v842_v19, 4 }
 0x251   : > { %v899_v61 = vadd.f32 %v898_v29, %v897_v30 }
 0x252   : > { %v844_v26 = vadd.f32 %v843_v22, %v842_v19 }
 0x253   : > { %v900_v34 = vrot.slane %v899_v61, 4 }
 0x254   : > { %v845_v28 = vrot.slane %v844_v26, 2 }
 0x255   : > { %v901_v36 = vadd.f32 %v900_v34, %v899_v61 }
 0x256   : > { %v846_v31 = vadd.f32 %v845_v28, %v844_v26 }
 0x257   : > { %v902_v38 = vrot.slane %v901_v36, 2 }
 0x258   : > { %v847_v32 = vrot.slane %v846_v31, 1 }
 0x259   : > { %v903_v40 = vadd.f32 %v902_v38, %v901_v36 }
 0x25a   : > { %v848_v35 = vadd.f32 %v847_v32, %v846_v31 }
 0x25b   : > { %v904_v42 = vrot.slane %v903_v40, 1 }
 0x25c   : > { %v849_v1 = vadd.f32 %v848_v35, %v811_v33 }
 0x25d   : > { %v905_v46 = vadd.f32 %v904_v42, %v903_v40 }
 0x25e   : > { %851 = vst.msk [vmem:[#allocation3] sm:$0x1] %vm850_vm2, %v849_v1 }
 0x25f   : > { %v906_v48 = vadd.f32 %v905_v46, %v852_v44 }
 0x261   : > { %907 = vst.msk [vmem:[#allocation3 + $0x1] sm:$0x1] %vm850_vm2, %v906_v48 }
 0x262 PF: > { %p1636_p10 = scmp.ne.s32.totalorder %s2048_s16, 1 }
 0x264   : > { %911 = sbr.rel (%p1636_p10) target bundleno = 652 (0x28c), region = 76 }
 0x269   : > { %v994_v50 = vsel %vm790_vm1, %v2383_v39, 0.0  ;;  %v995_v52 = vsel %vm790_vm1, %v2393_v43, 0.0  ;;  %v997_v54 = vsel %vm790_vm1, %v2376_v37, 0.0  ;;  %v999_v58 = vsel %vm790_vm1, %v2388_v41, 0.0  ;;  %v993_v61 = vld [vmem:[#allocation3] sm:$0x1] }
 0x26a   : > { %v996_v56 = vadd.f32 %v995_v52, %v994_v50  ;;  %v1035_v60 = vmul.f32 %v2383_v39, %v2383_v39  ;;  %v1036_v0 = vmul.f32 %v2393_v43, %v2393_v43  ;;  %v1037_v2 = vmul.f32 %v2376_v37, %v2376_v37  ;;  %v1034_v36 = vld [vmem:[#allocation3 + $0x1] sm:$0x1] }
 0x26b   : > { %v1038_v4 = vmul.f32 %v2388_v41, %v2388_v41  ;;  %v1001_v5 = vsel %vm790_vm1, %v2403_v47, 0.0  ;;  %v1039_v7 = vmul.f32 %v2403_v47, %v2403_v47  ;;  %v1003_v43 = vsel %vm790_vm1, %v2413_v51, 0.0 }
 0x26c   : > { %v998_v62 = vadd.f32 %v997_v54, %v996_v56  ;;  %v1051_v8 = vsel %vm790_vm1, %v1035_v60, 0.0  ;;  %v1052_v39 = vsel %vm790_vm1, %v1036_v0, 0.0  ;;  %v1054_v37 = vsel %vm790_vm1, %v1037_v2, 0.0 }
 0x26d   : > { %v1053_v59 = vadd.f32 %v1052_v39, %v1051_v8  ;;  %v1040_v41 = vmul.f32 %v2413_v51, %v2413_v51  ;;  %v1056_v10 = vsel %vm790_vm1, %v1038_v4, 0.0  ;;  %v1005_v11 = vsel %vm790_vm1, %v2398_v45, 0.0 }
 0x26e   : > { %v1000_v6 = vadd.f32 %v999_v58, %v998_v62  ;;  %v1041_v53 = vmul.f32 %v2398_v45, %v2398_v45  ;;  %v1058_v13 = vsel %vm790_vm1, %v1039_v7, 0.0  ;;  %v1007_v14 = vsel %vm790_vm1, %v2408_v49, 0.0 }
 0x26f   : > { %v1055_v47 = vadd.f32 %v1054_v37, %v1053_v59  ;;  %v1042_v51 = vmul.f32 %v2408_v49, %v2408_v49  ;;  %v1060_v57 = vsel %vm790_vm1, %v1040_v41, 0.0  ;;  %v1009_v17 = vsel %vm790_vm1, %v2423_v55, 0.0 }
 0x270   : > { %v1002_v9 = vadd.f32 %v1001_v5, %v1000_v6  ;;  %v1043_v45 = vmul.f32 %v2423_v55, %v2423_v55  ;;  %v1062_v20 = vsel %vm790_vm1, %v1041_v53, 0.0  ;;  %vm1032_vm3 = vcmask 253952  }
 0x271   : > { %v1057_v15 = vadd.f32 %v1056_v10, %v1055_v47  ;;  %v1064_v22 = vsel %vm790_vm1, %v1042_v51, 0.0 }
 0x272   : > { %v1004_v12 = vadd.f32 %v1003_v43, %v1002_v9  ;;  %v1066_v49 = vsel %vm790_vm1, %v1043_v45, 0.0 }
 0x273   : > { %v1059_v18 = vadd.f32 %v1058_v13, %v1057_v15 }
 0x274   : > { %v1006_v16 = vadd.f32 %v1005_v11, %v1004_v12 }
 0x275   : > { %v1061_v21 = vadd.f32 %v1060_v57, %v1059_v18 }
 0x276   : > { %v1008_v19 = vadd.f32 %v1007_v14, %v1006_v16 }
 0x277   : > { %v1063_v23 = vadd.f32 %v1062_v20, %v1061_v21 }
 0x278   : > { %v1010_v63 = vadd.f32 %v1009_v17, %v1008_v19 }
 0x279   : > { %v1065_v25 = vadd.f32 %v1064_v22, %v1063_v23 }
 0x27a   : > { %v1025_v24 = vrot.slane %v1010_v63, 4 }
 0x27b   : > { %v1067_v3 = vadd.f32 %v1066_v49, %v1065_v25 }
 0x27c   : > { %v1026_v26 = vadd.f32 %v1025_v24, %v1010_v63 }
 0x27d   : > { %v1082_v28 = vrot.slane %v1067_v3, 4 }
 0x27e   : > { %v1027_v27 = vrot.slane %v1026_v26, 2 }
 0x27f   : > { %v1083_v30 = vadd.f32 %v1082_v28, %v1067_v3 }
 0x280   : > { %v1028_v29 = vadd.f32 %v1027_v27, %v1026_v26 }
 0x281   : > { %v1084_v55 = vrot.slane %v1083_v30, 2 }
 0x282   : > { %v1029_v31 = vrot.slane %v1028_v29, 1 }
 0x283   : > { %v1085_v33 = vadd.f32 %v1084_v55, %v1083_v30 }
 0x284   : > { %v1030_v32 = vadd.f32 %v1029_v31, %v1028_v29 }
 0x285   : > { %v1086_v35 = vrot.slane %v1085_v33, 1 }
 0x286   : > { %v1031_v34 = vadd.f32 %v1030_v32, %v993_v61 }
 0x287   : > { %v1087_v1 = vadd.f32 %v1086_v35, %v1085_v33 }
 0x288   : > { %1033 = vst.msk [vmem:[#allocation3] sm:$0x1] %vm1032_vm3, %v1031_v34 }
 0x289   : > { %v1088_v38 = vadd.f32 %v1087_v1, %v1034_v36 }
 0x28b   : > { %1089 = vst.msk [vmem:[#allocation3 + $0x1] sm:$0x1] %vm1032_vm3, %v1088_v38 }
 0x28c PF: > { %p1637_p11 = scmp.ne.s32.totalorder %s2052_s17, 1 }
 0x28d   : > { %s1638_s24 = sshll.u32 (!%p1637_p11), %s2048_s16, 7  ;;  %s2851_s20 = sld [smem:[#allocation11_spill]] (!%p1637_p11) }
 0x28e   : > { %1093 = sbr.rel (%p1637_p11) target bundleno = 866 (0x362), region = 80  ;;  %s2852_s27 = sld [smem:[#allocation12_spill]] (!%p1637_p11) }
 0x28f   : > { %s2587_s23 = scalar_lea.vmem (!%p1637_p11), [#allocation2], %s1638_s24  ;;  %s2853_s25 = sld [smem:[#allocation13_spill]] (!%p1637_p11) }
 0x293   : > { %v1094_v40 = vld [vmem:[#allocation3] sm:$0x1]  ;;  %v1096_v42 = vld [vmem:[#allocation3 + $0x1] sm:$0x1]  ;;  %v1126_v54 = vlaneseq  ;;  %v1111_v4 = vld [vmem:[%s2587_s23 + $0x10] sm:$0xff]  ;;  %vm1208_vm4 = vcmask 261120  }
 0x294   : > { %v1095_v44 = vmul.f32 0.005, %v1094_v40  ;;  %v1097_v46 = vmul.f32 0.005, %v1096_v42  ;;  %v1100_v58 = vld [vmem:[%s2851_s20] sm:$0x1] }
 0x295   : > { %v1127_v56 = vshrl.u32 %v1126_v54, 7  ;;  %v1104_v2 = vld [vmem:[%s2852_s27] sm:$0x1]  ;;  %v1112_v6 = vld [vmem:[%s2587_s23 + $0x18] sm:$0xff]  ;;  %v1110_v7 = vld [vmem:[%s2587_s23 + $0x8] sm:$0xff]  ;;  %vm1280_vm5 = vcmask 7168  }
 0x296   : > { %v1098_v48 = vmul.f32 %v1095_v44, %v1095_v44  ;;  %v1109_v5 = vld [vmem:[%s2587_s23] sm:$0xff]  ;;  %v1114_v43 = vld [vmem:[%s2587_s23 + $0x28] sm:$0xff]  ;;  %v1116_v37 = vld [vmem:[%s2587_s23 + $0x38] sm:$0xff] }
 0x297   : > { %v1128_v60 = vsub.s32 0, %v1127_v56  ;;  %v1113_v59 = vld [vmem:[%s2587_s23 + $0x20] sm:$0xff]  ;;  %v1115_v47 = vld [vmem:[%s2587_s23 + $0x30] sm:$0xff]  ;;  %v1118_v16 = vld [vmem:[%s2587_s23 + $0x48] sm:$0xff] }
 0x298   : > { %v1099_v50 = vsub.f32 %v1097_v46, %v1098_v48  ;;  %v1117_v45 = vld [vmem:[%s2587_s23 + $0x40] sm:$0xff]  ;;  %v1120_v30 = vld [vmem:[%s2587_s23 + $0x58] sm:$0xff]  ;;  %v1119_v33 = vld [vmem:[%s2587_s23 + $0x50] sm:$0xff] }
 0x299   : > { %v2618_v20 = vld [vmem:[%s2853_s25] ss:$0 sm:$0xff]  ;;  %v1122_v46 = vld [vmem:[%s2587_s23 + $0x68] sm:$0xff] }
 0x29a   : > { %v1101_v52 = vadd.f32 1e-05, %v1099_v50  ;;  %v1121_v56 = vld [vmem:[%s2587_s23 + $0x60] sm:$0xff] }
 0x29c   : > { %1922 = vrsqrt.f32 %v1101_v52 }
 0x2a9   : > { %v1923_v62 = vpop.eup %1922 }
 0x2aa   : > { %v1103_v0 = vmul.f32 %v1923_v62, %v1100_v58 }
 0x2ac   : > { %v1105_v8 = vmul.f32 %v1103_v0, %v1095_v44  ;;  %v2593_v39 = vrot.slane %v1103_v0, %v1128_v60 }
 0x2ae   : > { %v1106_v9 = vsub.f32 %v1104_v2, %v1105_v8  ;;  %v1133_v41 = vmul.f32 %v2593_v39, %v1111_v4  ;;  %v1131_v10 = vmul.f32 %v2593_v39, %v1109_v5  ;;  %v1134_v11 = vmul.f32 %v2593_v39, %v1112_v6 }
 0x2af   : > { %v1132_v12 = vmul.f32 %v2593_v39, %v1110_v7  ;;  %v1136_v53 = vmul.f32 %v2593_v39, %v1114_v43  ;;  %v1135_v13 = vmul.f32 %v2593_v39, %v1113_v59  ;;  %v1138_v14 = vmul.f32 %v2593_v39, %v1116_v37  ;;  %v1124_v43 = vld [vmem:[%s2587_s23 + $0x78] sm:$0xff]  ;;  %v1123_v59 = vld [vmem:[%s2587_s23 + $0x70] sm:$0xff] }
 0x2b0   : > { %v2606_v15 = vrot.slane %v1106_v9, %v1128_v60  ;;  %v1137_v51 = vmul.f32 %v2593_v39, %v1115_v47  ;;  %v1140_v23 = vmul.f32 %v2593_v39, %v1118_v16  ;;  %v1139_v29 = vmul.f32 %v2593_v39, %v1117_v45 }
 0x2b1   : > { %v1142_v1 = vmul.f32 %v2593_v39, %v1120_v30  ;;  %v1141_v44 = vmul.f32 %v2593_v39, %v1119_v33  ;;  %v1144_v60 = vmul.f32 %v2593_v39, %v1122_v46  ;;  %v1143_v4 = vmul.f32 %v2593_v39, %v1121_v56 }
 0x2b2   : > { %v1155_v57 = vadd.f32 %v2606_v15, %v1133_v41  ;;  %v1153_v17 = vadd.f32 %v2606_v15, %v1131_v10  ;;  %v1156_v18 = vadd.f32 %v2606_v15, %v1134_v11  ;;  %v1154_v19 = vadd.f32 %v2606_v15, %v1132_v12 }
 0x2b3   : > { %v1158_v21 = vadd.f32 %v2606_v15, %v1136_v53  ;;  %v1157_v63 = vadd.f32 %v2606_v15, %v1135_v13  ;;  %v1160_v22 = vadd.f32 %v2606_v15, %v1138_v14  ;;  %v1159_v28 = vadd.f32 %v2606_v15, %v1137_v51 }
 0x2b4   : > { %v1171_v24 = vmax.f32 %v1155_v57, 0.0  ;;  %v1169_v49 = vmax.f32 %v1153_v17, 0.0  ;;  %v1172_v25 = vmax.f32 %v1156_v18, 0.0  ;;  %v1170_v26 = vmax.f32 %v1154_v19, 0.0 }
 0x2b5   : > { %v1174_v3 = vmax.f32 %v1158_v21, 0.0  ;;  %v1173_v27 = vmax.f32 %v1157_v63, 0.0  ;;  %v1176_v36 = vmax.f32 %v1160_v22, 0.0  ;;  %v1175_v42 = vmax.f32 %v1159_v28, 0.0 }
 0x2b6   : > { %v1194_v31 = vmul.f32 %v2618_v20, %v1171_v24  ;;  %v1192_v61 = vmul.f32 %v2618_v20, %v1169_v49  ;;  %v1195_v55 = vmul.f32 %v2618_v20, %v1172_v25  ;;  %v1193_v32 = vmul.f32 %v2618_v20, %v1170_v26 }
 0x2b7   : > { %v1197_v38 = vmul.f32 %v2618_v20, %v1174_v3  ;;  %v1196_v40 = vmul.f32 %v2618_v20, %v1173_v27  ;;  %v1162_v52 = vadd.f32 %v2606_v15, %v1140_v23  ;;  %v1161_v54 = vadd.f32 %v2606_v15, %v1139_v29  ;;  %v1640_v29 = vld [vmem:[#allocation4] ss:$0 sm:$0xff] }
 0x2b8   : > { %v1215_v34 = vsel %vm1208_vm4, %v1194_v31, 0.0  ;;  %v1209_v35 = vsel %vm1208_vm4, %v1192_v61, 0.0  ;;  %v1218_v48 = vsel %vm1208_vm4, %v1195_v55, 0.0  ;;  %v1212_v50 = vsel %vm1208_vm4, %v1193_v32, 0.0 }
 0x2b9   : > { %1216 = vadd.xlane.f32.xlu1 %v1215_v34  ;;  %1210 = vadd.xlane.f32.xlu0 %v1209_v35  ;;  %v1199_v58 = vmul.f32 %v2618_v20, %v1176_v36  ;;  %v1224_v62 = vsel %vm1208_vm4, %v1197_v38, 0.0  ;;  %v1221_v0 = vsel %vm1208_vm4, %v1196_v40, 0.0  ;;  %v1198_v2 = vmul.f32 %v2618_v20, %v1175_v42 }
 0x2ba   : > { %v1178_v5 = vmax.f32 %v1162_v52, 0.0  ;;  %v1177_v6 = vmax.f32 %v1161_v54, 0.0  ;;  %v1164_v7 = vadd.f32 %v2606_v15, %v1142_v1  ;;  %v1163_v8 = vadd.f32 %v2606_v15, %v1141_v44 }
 0x2bb   : > { %v1230_v37 = vsel %vm1208_vm4, %v1199_v58, 0.0  ;;  %v1166_v9 = vadd.f32 %v2606_v15, %v1144_v60  ;;  %v1227_v41 = vsel %vm1208_vm4, %v1198_v2, 0.0  ;;  %v1165_v10 = vadd.f32 %v2606_v15, %v1143_v4 }
 0x2bc   : > { %v1146_v11 = vmul.f32 %v2593_v39, %v1124_v43  ;;  %v1145_v47 = vmul.f32 %v2593_v39, %v1123_v59  ;;  %v1201_v12 = vmul.f32 %v2618_v20, %v1178_v5  ;;  %v1200_v53 = vmul.f32 %v2618_v20, %v1177_v6 }
 0x2bd   : > { %1219 = vadd.xlane.f32.xlu1 %v1218_v48  ;;  %1213 = vadd.xlane.f32.xlu0 %v1212_v50  ;;  %v1180_v13 = vmax.f32 %v1164_v7, 0.0  ;;  %v1179_v14 = vmax.f32 %v1163_v8, 0.0  ;;  %v1182_v16 = vmax.f32 %v1166_v9, 0.0  ;;  %v1181_v51 = vmax.f32 %v1165_v10, 0.0 }
 0x2be   : > { %v1168_v57 = vadd.f32 %v2606_v15, %v1146_v11  ;;  %v1167_v17 = vadd.f32 %v2606_v15, %v1145_v47  ;;  %v1236_v18 = vsel %vm1208_vm4, %v1201_v12, 0.0  ;;  %v1233_v19 = vsel %vm1208_vm4, %v1200_v53, 0.0 }
 0x2bf   : > { %v1203_v39 = vmul.f32 %v2618_v20, %v1180_v13  ;;  %v1202_v45 = vmul.f32 %v2618_v20, %v1179_v14  ;;  %v1205_v21 = vmul.f32 %v2618_v20, %v1182_v16  ;;  %v1204_v63 = vmul.f32 %v2618_v20, %v1181_v51 }
 0x2c0   : > { %v1184_v24 = vmax.f32 %v1168_v57, 0.0  ;;  %v1183_v15 = vmax.f32 %v1167_v17, 0.0 }
 0x2c1   : > { %1225 = vadd.xlane.f32.xlu1 %v1224_v62  ;;  %1222 = vadd.xlane.f32.xlu0 %v1221_v0  ;;  %v1242_v22 = vsel %vm1208_vm4, %v1203_v39, 0.0  ;;  %v1239_v23 = vsel %vm1208_vm4, %v1202_v45, 0.0  ;;  %v1248_v49 = vsel %vm1208_vm4, %v1205_v21, 0.0  ;;  %v1245_v25 = vsel %vm1208_vm4, %v1204_v63, 0.0 }
 0x2c2   : > { %v1207_v26 = vmul.f32 %v2618_v20, %v1184_v24  ;;  %v1206_v3 = vmul.f32 %v2618_v20, %v1183_v15 }
 0x2c4   : > { %v1254_v27 = vsel %vm1208_vm4, %v1207_v26, 0.0  ;;  %v1251_v28 = vsel %vm1208_vm4, %v1206_v3, 0.0 }
 0x2c5   : > { %1231 = vadd.xlane.f32.xlu1 %v1230_v37  ;;  %1228 = vadd.xlane.f32.xlu0 %v1227_v41 }
 0x2c9   : > { %1237 = vadd.xlane.f32.xlu1 %v1236_v18  ;;  %1234 = vadd.xlane.f32.xlu0 %v1233_v19 }
 0x2cd   : > { %1243 = vadd.xlane.f32.xlu1 %v1242_v22  ;;  %1240 = vadd.xlane.f32.xlu0 %v1239_v23 }
 0x2d1   : > { %1249 = vadd.xlane.f32.xlu1 %v1248_v49  ;;  %1246 = vadd.xlane.f32.xlu0 %v1245_v25 }
 0x2d5   : > { %1255 = vadd.xlane.f32.xlu1 %v1254_v27  ;;  %1252 = vadd.xlane.f32.xlu0 %v1251_v28 }
 0x342   : > { %v1217_v30 = vpop.xlane.xlu1 %1216  ;;  %v1211_v31 = vpop.xlane.xlu0 %1210 }
 0x343   : > { %v1266_v61 = vadd.f32 %v1640_v29, %v1217_v30  ;;  %v1264_v55 = vadd.f32 %v1640_v29, %v1211_v31 }
 0x345   : > { %1283 = vst.msk [vmem:[%s2302_s9 + $0x10] sm:$0xff] %vm1280_vm5, %v1266_v61  ;;  %1281 = vst.msk [vmem:[%s2302_s9] sm:$0xff] %vm1280_vm5, %v1264_v55 }
 0x346   : > { %v1220_v20 = vpop.xlane.xlu1 %1219  ;;  %v1214_v32 = vpop.xlane.xlu0 %1213 }
 0x347   : > { %v1267_v33 = vadd.f32 %v1640_v29, %v1220_v20  ;;  %v1265_v34 = vadd.f32 %v1640_v29, %v1214_v32 }
 0x349   : > { %1284 = vst.msk [vmem:[%s2302_s9 + $0x18] sm:$0xff] %vm1280_vm5, %v1267_v33  ;;  %1282 = vst.msk [vmem:[%s2302_s9 + $0x8] sm:$0xff] %vm1280_vm5, %v1265_v34 }
 0x34a   : > { %v1226_v35 = vpop.xlane.xlu1 %1225  ;;  %v1223_v36 = vpop.xlane.xlu0 %1222 }
 0x34b   : > { %v1269_v1 = vadd.f32 %v1640_v29, %v1226_v35  ;;  %v1268_v38 = vadd.f32 %v1640_v29, %v1223_v36 }
 0x34d   : > { %1286 = vst.msk [vmem:[%s2302_s9 + $0x28] sm:$0xff] %vm1280_vm5, %v1269_v1  ;;  %1285 = vst.msk [vmem:[%s2302_s9 + $0x20] sm:$0xff] %vm1280_vm5, %v1268_v38 }
 0x34e   : > { %v1232_v40 = vpop.xlane.xlu1 %1231  ;;  %v1229_v42 = vpop.xlane.xlu0 %1228 }
 0x34f   : > { %v1271_v44 = vadd.f32 %v1640_v29, %v1232_v40  ;;  %v1270_v46 = vadd.f32 %v1640_v29, %v1229_v42 }
 0x351   : > { %1288 = vst.msk [vmem:[%s2302_s9 + $0x38] sm:$0xff] %vm1280_vm5, %v1271_v44  ;;  %1287 = vst.msk [vmem:[%s2302_s9 + $0x30] sm:$0xff] %vm1280_vm5, %v1270_v46 }
 0x352   : > { %v1238_v48 = vpop.xlane.xlu1 %1237  ;;  %v1235_v50 = vpop.xlane.xlu0 %1234 }
 0x353   : > { %v1273_v52 = vadd.f32 %v1640_v29, %v1238_v48  ;;  %v1272_v54 = vadd.f32 %v1640_v29, %v1235_v50 }
 0x355   : > { %1290 = vst.msk [vmem:[%s2302_s9 + $0x48] sm:$0xff] %vm1280_vm5, %v1273_v52  ;;  %1289 = vst.msk [vmem:[%s2302_s9 + $0x40] sm:$0xff] %vm1280_vm5, %v1272_v54 }
 0x356   : > { %v1244_v56 = vpop.xlane.xlu1 %1243  ;;  %v1241_v58 = vpop.xlane.xlu0 %1240 }
 0x357   : > { %v1275_v60 = vadd.f32 %v1640_v29, %v1244_v56  ;;  %v1274_v62 = vadd.f32 %v1640_v29, %v1241_v58 }
 0x359   : > { %1292 = vst.msk [vmem:[%s2302_s9 + $0x58] sm:$0xff] %vm1280_vm5, %v1275_v60  ;;  %1291 = vst.msk [vmem:[%s2302_s9 + $0x50] sm:$0xff] %vm1280_vm5, %v1274_v62 }
 0x35a   : > { %v1250_v0 = vpop.xlane.xlu1 %1249  ;;  %v1247_v2 = vpop.xlane.xlu0 %1246 }
 0x35b   : > { %v1277_v4 = vadd.f32 %v1640_v29, %v1250_v0  ;;  %v1276_v5 = vadd.f32 %v1640_v29, %v1247_v2 }
 0x35d   : > { %1294 = vst.msk [vmem:[%s2302_s9 + $0x68] sm:$0xff] %vm1280_vm5, %v1277_v4  ;;  %1293 = vst.msk [vmem:[%s2302_s9 + $0x60] sm:$0xff] %vm1280_vm5, %v1276_v5 }
 0x35e   : > { %v1256_v6 = vpop.xlane.xlu1 %1255  ;;  %v1253_v7 = vpop.xlane.xlu0 %1252 }
 0x35f   : > { %v1279_v8 = vadd.f32 %v1640_v29, %v1256_v6  ;;  %v1278_v43 = vadd.f32 %v1640_v29, %v1253_v7 }
 0x361   : > { %1296 = vst.msk [vmem:[%s2302_s9 + $0x78] sm:$0xff] %vm1280_vm5, %v1279_v8  ;;  %1295 = vst.msk [vmem:[%s2302_s9 + $0x70] sm:$0xff] %vm1280_vm5, %v1278_v43 }
 0x362 PF: > { %1303 = sbr.rel (!%p2246_p12) target bundleno = 914 (0x392), region = 84  ;;  %s2854_s20 = sld [smem:[#allocation14_spill]] (%p2246_p12) }
 0x363   : > { %s1304_s28 = smul.u32 (%p2246_p12), %s2048_s16, %s2052_s17 }
 0x365   : > { %s1642_s7 = sshll.u32 (%p2246_p12), %s1304_s28, 4  ;;  %s1659_s29 = sshll.u32 (%p2246_p12), %s1304_s28, 7 }
 0x366   : > { %s1306_s24 = ssub.s32 (%p2246_p12), 25, %s1642_s7 }
 0x367   : > { %p1307_p13 = scmp.lt.s32.totalorder %s1306_s24, 16 }
 0x368   : > { %s2717_s11 = scalar_lea.vmem %s2854_s20, %s1659_s29  }
 0x369   : > { %s2876_s24 = smov (!%p1307_p13, %s1306_s24), 16 }
 0x36a   : > { %s1643_s13 = sshll.u32 %s2876_s24, 7 }
 0x36b   : > { %p1646_p0 = scmp.eq.s32.totalorder %s1643_s13, 0 }
 0x36c   : > { %s2723_s8 = sshrl.u32 (!%p1646_p0), %s2876_s24, 4 }
 0x36d   : > { %1315 = sbr.rel (%p1646_p0) target bundleno = 914 (0x392), region = 88  ;;  %p1647_p12 = scmp.le.s32.totalorder (!%p1646_p0), %s2723_s8, 0 }
 0x372   : > { %1543 = sbr.rel (%p1647_p12) target bundleno = 897 (0x381), region = 172  ;;  %s2855_s16 = smov (!%p1647_p12), %s2717_s11 }
 0x373   : > { %s2856_s17 = smov (!%p1647_p12), %s2302_s9  ;;  %s2732_s27 = smov (!%p1647_p12), 0  }
 0x374   : > { %s2734_s23 = smov (!%p1647_p12), 0  }
 0x377 LB: >> { %v1408_v59 = vld [vmem:[%s2072_s17] sm:$0xff]  ;;  %v1410_v37 = vld [vmem:[%s2072_s17 + $0x8] sm:$0xff]  ;;  %v1412_v9 = vld [vmem:[%s2072_s17 + $0x10] sm:$0xff]  ;;  %s1440_s26 = sadd.s32 1, %s2076_s27  ;;  %s1402_s23 = sadd.s32 1, %s2080_s23   ;;  %s2080_s23 = sphi %s2734_s23, %s1402_s23   ;;  %s2076_s27 = sphi %s2732_s27, %s2857_s27   ;;  %s2072_s17 = sphi %s2856_s17, %s1445_s17   ;;  %s2068_s16 = sphi %s2855_s16, %s1446_s16  }
 0x378   : >> { %1409 = vst [vmem:[%s2068_s16] sm:$0xff] %v1408_v59  ;;  %1411 = vst [vmem:[%s2068_s16 + $0x8] sm:$0xff] %v1410_v37  ;;  %v1414_v41 = vld [vmem:[%s2072_s17 + $0x18] sm:$0xff]  ;;  %v1416_v10 = vld [vmem:[%s2072_s17 + $0x20] sm:$0xff]  ;;  %p1441_p2 = scmp.ge.s32.totalorder %s1440_s26, %s2723_s8  ;;  %p1401_p3 = scmp.ge.s32.totalorder %s1402_s23, %s2723_s8 }
 0x379   : >> { %1413 = vst [vmem:[%s2068_s16 + $0x10] sm:$0xff] %v1412_v9  ;;  %v1418_v11 = vld [vmem:[%s2072_s17 + $0x28] sm:$0xff]  ;;  %1415 = vst [vmem:[%s2068_s16 + $0x18] sm:$0xff] %v1414_v41  ;;  %v1420_v47 = vld [vmem:[%s2072_s17 + $0x30] sm:$0xff] }
 0x37a   : >> { %1417 = vst [vmem:[%s2068_s16 + $0x20] sm:$0xff] %v1416_v10  ;;  %1419 = vst [vmem:[%s2068_s16 + $0x28] sm:$0xff] %v1418_v11  ;;  %v1422_v12 = vld [vmem:[%s2072_s17 + $0x38] sm:$0xff]  ;;  %v1424_v53 = vld [vmem:[%s2072_s17 + $0x40] sm:$0xff]  ;;  %s2878_s26 = smov (%p1441_p2, %s1440_s26), 0 }
 0x37b   : >> { %1421 = vst [vmem:[%s2068_s16 + $0x30] sm:$0xff] %v1420_v47  ;;  %1423 = vst [vmem:[%s2068_s16 + $0x38] sm:$0xff] %v1422_v12  ;;  %v1426_v13 = vld [vmem:[%s2072_s17 + $0x48] sm:$0xff]  ;;  %v1428_v14 = vld [vmem:[%s2072_s17 + $0x50] sm:$0xff]  ;;  %s1648_s22 = sshll.u32 %s2878_s26, 7  ;;  %s2857_s27 = smov %s2878_s26 }
 0x37c   : >> { %1425 = vst [vmem:[%s2068_s16 + $0x40] sm:$0xff] %v1424_v53  ;;  %v1430_v16 = vld [vmem:[%s2072_s17 + $0x58] sm:$0xff]  ;;  %1427 = vst [vmem:[%s2068_s16 + $0x48] sm:$0xff] %v1426_v13  ;;  %v1432_v51 = vld [vmem:[%s2072_s17 + $0x60] sm:$0xff]  ;;  %1404 = sbr.rel (!%p1401_p3) target bundleno = 887 (0x377), region = 178 }
 0x37d   : >> { %1429 = vst [vmem:[%s2068_s16 + $0x50] sm:$0xff] %v1428_v14  ;;  %1431 = vst [vmem:[%s2068_s16 + $0x58] sm:$0xff] %v1430_v16  ;;  %v1434_v57 = vld [vmem:[%s2072_s17 + $0x68] sm:$0xff]  ;;  %v1436_v17 = vld [vmem:[%s2072_s17 + $0x70] sm:$0xff] }
 0x37e   : >> { %1433 = vst [vmem:[%s2068_s16 + $0x60] sm:$0xff] %v1432_v51  ;;  %1435 = vst [vmem:[%s2068_s16 + $0x68] sm:$0xff] %v1434_v57  ;;  %v1438_v18 = vld [vmem:[%s2072_s17 + $0x78] sm:$0xff]  ;;  %s1445_s17 = scalar_lea.vmem %s2302_s9, %s1648_s22 [#allocation7]  }
 0x37f   : >> { %1437 = vst [vmem:[%s2068_s16 + $0x70] sm:$0xff] %v1436_v17  ;;  %1439 = vst [vmem:[%s2068_s16 + $0x78] sm:$0xff] %v1438_v18  ;;  %s1446_s16 = scalar_lea.vmem %s2717_s11, %s1648_s22  }
 0x381 PF: > { %s2792_s25 = sand.u32 15, %s2876_s24   ;;  %s1660_s28 = sshll.u32 %s2723_s8, 7 }
 0x382   : > { %s1451_s7 = scalar_lea.vmem %s2302_s9, %s1660_s28 [#allocation7]   ;;  %s1453_s29 = scalar_lea.vmem %s2717_s11, %s1660_s28  }
 0x383   : > { %p1653_p4 = scmp.le.s32.totalorder %s2792_s25, 0 }
 0x384   : > { %s2082_s30 = smov (!%p1653_p4), %s1453_s29   ;;  %s2086_s10 = smov (!%p1653_p4), %s1451_s7  }
 0x385   : > { %1557 = sbr.rel (%p1653_p4) target bundleno = 914 (0x392), region = 183  ;;  %s2090_s20 = smov (!%p1653_p4), 0  }
 0x386   : > { %s2094_s13 = smov (!%p1653_p4), 0  }
 0x38a LB: >> { %v1463_v19 = vld [vmem:[%s2088_s10] sm:$0xff]  ;;  %s1465_s24 = sadd.s32 1, %s2092_s20  ;;  %s1457_s13 = sadd.s32 1, %s2096_s13   ;;  %s2096_s13 = sphi %s2094_s13, %s1457_s13   ;;  %s2092_s20 = sphi %s2090_s20, %s2091_s20   ;;  %s2088_s10 = sphi %s2086_s10, %s1470_s10   ;;  %s2084_s30 = sphi %s2082_s30, %s1471_s30  }
 0x38b   : >> { %1464 = vst [vmem:[%s2084_s30] sm:$0xff] %v1463_v19  ;;  %p1466_p5 = scmp.ge.s32.totalorder %s1465_s24, %s2792_s25  ;;  %p1456_p1 = scmp.ge.s32.totalorder %s1457_s13, %s2792_s25 }
 0x38d   : >> { %s2880_s24 = smov (%p1466_p5, %s1465_s24), 0  ;;  %1459 = sbr.rel (!%p1456_p1) target bundleno = 906 (0x38a), region = 189 }
 0x38e   : >> { %s1654_s9 = sshll.u32 %s2880_s24, 3  ;;  %s2091_s20 = smov %s2880_s24  }
 0x38f   : >> { %s1470_s10 = scalar_lea.vmem %s1451_s7, %s1654_s9 [#allocation7]   ;;  %s1471_s30 = scalar_lea.vmem %s1453_s29, %s1654_s9  }
 0x392 PF: > { %s24_s19 = sadd.s32 1, %s2064_s19   ;;  %s2858_s17 = sld [smem:[#allocation9_spill]] }
 0x393   : > { %p21_p6 = scmp.ge.s32.totalorder %s24_s19, 6   ;;  %s2859_s8 = sld [smem:[#allocation10_spill]] }
 0x394   : > { %s2860_s11 = smov %s2032_s12  ;;  %s2861_s12 = smov %s2244_s5 }
 0x395   : > { %s2862_s13 = smov %s2040_s14  ;;  %s2863_s14 = smov %s2044_s15 }
 0x396   : > { %s2864_s15 = smov %s2241_s6  ;;  %s2865_s16 = smov %s2056_s18 }
 0x397   : > { %s2866_s18 = smov %s2868_s21  ;;  %23 = sbr.rel (!%p21_p6) target bundleno = 11 (0xb), region = 200 }
 0x39c   :  { %1487 = vsyncpa [#allocation6], 1 }
 0x39d   :  { %1489 = vsyncpa [#allocation6 + $0x1], 1 }

</bundles_post_ra>
